<compile_context>
chip_gen: v7x
topology: tpu7x:2x2x1
jax: 0.10.0
libtpu: 0.0.40
codegen_flags: <defaults>
</compile_context>

<pallas_src>
import jax
import jax.numpy as jnp
from jax import lax
from jax.experimental import pallas as pl
from jax.experimental.pallas import tpu as pltpu

# CLIP-shaped (small) hyperparameters.
B, S = 2, 8                        # batch, context length
D, H = 32, 4                       # width, heads
DH = D // H                        # head dim (8)
FF = 4 * D                         # MLP hidden (128)
VOCAB, EMBED = 64, 16              # vocab size, text-projection dim
N_LAYERS = 2
LN_EPS = 1e-5

# Lane-dense padded sizes.
BS = B * S                         # batch folded into matmul M (16)
DP = 128                           # padded model width (lane dim)
DHP = DP // H                      # padded per-head width (32)
FFP = ((FF + 127) // 128) * 128    # padded MLP hidden (128)
PP = 128                           # padded projection output width


# --------------------------------------------------------------------------- #
# Pallas kernel
# --------------------------------------------------------------------------- #
def _layer_norm_padded(x, g, b):
    """LayerNorm over the D real columns; padded columns of x are exactly zero."""
    mu = jnp.sum(x, axis=-1, keepdims=True) * (1.0 / D)
    ms = jnp.sum(x * x, axis=-1, keepdims=True) * (1.0 / D)
    var = ms - mu * mu
    return (x - mu) * lax.rsqrt(var + LN_EPS) * g + b


def text_encoder_kernel(x_ref,      # (BS, DP) f32 embedded tokens, batch folded into M
                        mask_ref,   # (BS, BS) f32 block-diagonal causal additive bias
                        sel_ref,    # (B, BS)  f32 one-hot EOT row selector
                        wqkv_ref,   # (L, DP, 3*DP) bf16  (scale folded into Q cols)
                        wo_ref,     # (L, DP, DP)   bf16
                        w1_ref,     # (L, DP, FFP)  bf16
                        w2_ref,     # (L, FFP, DP)  bf16
                        vecs_ref,   # (L, 8, 3*DP)  f32  consolidated bias/LN vectors
                        lnf_ref,    # (2, DP) f32  ln_final gamma / beta
                        proj_ref,   # (DP, PP) bf16 text_projection
                        out_ref):   # (B, PP) f32
    bf16 = jnp.bfloat16
    f32 = jnp.float32

    x0 = x_ref[...]                 # (BS, DP) f32 residual stream (padded cols stay 0)
    mask = mask_ref[...]            # (BS, BS) f32

    def layer_body(l, x):
        vecs = vecs_ref[l]                          # (8, 3*DP) f32
        bqkv = vecs[0:1, :]                         # (1, 3*DP)  (Q part pre-scaled)
        bo = vecs[1:2, :DP]
        g1, be1 = vecs[2:3, :DP], vecs[3:4, :DP]
        g2, be2 = vecs[4:5, :DP], vecs[5:6, :DP]
        bm1 = vecs[6:7, :FFP]
        bm2 = vecs[7:8, :DP]

        # ---- pre-LN multi-head self-attention (block-diagonal causal) ----
        h1 = _layer_norm_padded(x, g1, be1)
        qkv = jnp.dot(h1.astype(bf16), wqkv_ref[l],
                      preferred_element_type=f32) + bqkv             # (BS, 3*DP)

        ctx_heads = []
        for hh in range(H):   # tiny (16,32) ops on 32-lane-aligned slices
            qh = qkv[:, hh * DHP:(hh + 1) * DHP].astype(bf16)
            kh = qkv[:, DP + hh * DHP:DP + (hh + 1) * DHP].astype(bf16)
            vh = qkv[:, 2 * DP + hh * DHP:2 * DP + (hh + 1) * DHP].astype(bf16)
            s = lax.dot_general(qh, kh, (((1,), (1,)), ((), ())),
                                preferred_element_type=f32)          # (BS, BS)
            s = s + mask                                             # causal + cross-seq mask
            s = s - jnp.max(s, axis=-1, keepdims=True)
            p = jnp.exp(s)
            p = p * pl.reciprocal(jnp.sum(p, axis=-1, keepdims=True), approx=True)
            ctx_heads.append(jnp.dot(p.astype(bf16), vh,
                                     preferred_element_type=f32))    # (BS, DHP)
        ctx = jnp.concatenate(ctx_heads, axis=-1)                    # (BS, DP) head-major lanes

        attn = jnp.dot(ctx.astype(bf16), wo_ref[l],
                       preferred_element_type=f32) + bo              # (BS, DP)
        x = x + attn

        # ---- pre-LN MLP with QuickGELU ----
        h2 = _layer_norm_padded(x, g2, be2)
        m = jnp.dot(h2.astype(bf16), w1_ref[l],
                    preferred_element_type=f32) + bm1                # (BS, FFP)
        m = m * jax.nn.sigmoid(1.702 * m)                            # QuickGELU (f32, EUP)
        m = jnp.dot(m.astype(bf16), w2_ref[l],
                    preferred_element_type=f32) + bm2                # (BS, DP)
        return x + m

    x = lax.fori_loop(0, N_LAYERS, layer_body, x0, unroll=True)

    # ---- epilogue: EOT gather (exact one-hot matmul) + ln_final + projection ----
    x_eot = jnp.dot(sel_ref[...], x, preferred_element_type=f32)     # (B, DP)
    x_eot = _layer_norm_padded(x_eot, lnf_ref[0:1, :], lnf_ref[1:2, :])
    out_ref[...] = jnp.dot(x_eot.astype(bf16), proj_ref[...],
                           preferred_element_type=f32)               # (B, PP)


# --------------------------------------------------------------------------- #
# Parameters: natural CLIP shapes + packing into the lane-dense kernel layout
# --------------------------------------------------------------------------- #
def init_params(key):
    ks = iter(jax.random.split(key, 64))
    p = {
        'tok_emb': 0.02 * jax.random.normal(next(ks), (VOCAB, D), jnp.float32),
        'pos_emb': 0.01 * jax.random.normal(next(ks), (S, D), jnp.float32),
        'lnfg': jnp.ones((D,), jnp.float32),
        'lnfb': jnp.zeros((D,), jnp.float32),
        'text_projection': 0.02 * jax.random.normal(next(ks), (D, EMBED), jnp.float32),
        'layers': [],
    }
    for _ in range(N_LAYERS):
        p['layers'].append((
            0.02 * jax.random.normal(next(ks), (D, 3 * D), jnp.float32),   # wqkv
            0.01 * jax.random.normal(next(ks), (3 * D,), jnp.float32),     # bqkv
            0.02 * jax.random.normal(next(ks), (D, D), jnp.float32),       # wo
            0.01 * jax.random.normal(next(ks), (D,), jnp.float32),         # bo
            jnp.ones((D,), jnp.float32), jnp.zeros((D,), jnp.float32),     # ln1 gamma/beta
            jnp.ones((D,), jnp.float32), jnp.zeros((D,), jnp.float32),     # ln2 gamma/beta
            0.02 * jax.random.normal(next(ks), (D, FF), jnp.float32),      # w1
            0.01 * jax.random.normal(next(ks), (FF,), jnp.float32),        # b1
            0.02 * jax.random.normal(next(ks), (FF, D), jnp.float32),      # w2
            0.01 * jax.random.normal(next(ks), (D,), jnp.float32),         # b2
        ))
    return p


def pack_params(p):
    """Zero-pad / head-expand / stack parameters into the lane-dense kernel layout."""
    wdt = jnp.bfloat16     # matmul-operand dtype (accumulation stays f32 in-kernel)
    scale = DH ** -0.5     # folded into packed Q weights & bias (no in-kernel mul)
    W = 3 * DP             # lane width of the consolidated vector block

    def pad_axis(a, axis, size):
        pads = [(0, 0)] * a.ndim
        pads[axis] = (0, size - a.shape[axis])
        return jnp.pad(a, pads)

    def pad_in_proj(w):    # (D, D) -> (DP, DP); cols head-expanded DH -> DHP
        w = pad_axis(w.reshape(D, H, DH), 2, DHP).reshape(D, DP)
        return pad_axis(w, 0, DP)

    def pad_head_vec(v):   # (D,) -> (DP,); head-expanded DH -> DHP
        return pad_axis(v.reshape(H, DH), 1, DHP).reshape(DP)

    def pad_out_proj(w):   # (D, D) -> (DP, DP); rows head-expanded, cols zero-padded
        w = pad_axis(w.reshape(H, DH, D), 1, DHP)
        return pad_axis(w, 2, DP).reshape(DP, DP)

    def pad_vec(v, width=DP):   # (n,) -> (width,)
        return pad_axis(v, 0, width)

    wqkv_l, wo_l, w1_l, w2_l, vecs_l = [], [], [], [], []
    for (wqkv, bqkv, wo, bo, g1, be1, g2, be2, w1, bb1, w2, bb2) in p['layers']:
        wq = pad_in_proj(wqkv[:, 0 * D:1 * D]) * scale
        wk = pad_in_proj(wqkv[:, 1 * D:2 * D])
        wv = pad_in_proj(wqkv[:, 2 * D:3 * D])
        wqkv_l.append(jnp.concatenate([wq, wk, wv], axis=1).astype(wdt))
        wo_l.append(pad_out_proj(wo).astype(wdt))
        w1_l.append(pad_axis(pad_axis(w1, 0, DP), 1, FFP).astype(wdt))
        w2_l.append(pad_axis(pad_axis(w2, 0, FFP), 1, DP).astype(wdt))

        bq = pad_head_vec(bqkv[0 * D:1 * D]) * scale
        bk = pad_head_vec(bqkv[1 * D:2 * D])
        bv = pad_head_vec(bqkv[2 * D:3 * D])
        rows = [
            jnp.concatenate([bq, bk, bv]),        # row 0: bqkv (3*DP, Q pre-scaled)
            pad_vec(bo, W),                       # row 1: attn out bias
            pad_vec(g1, W), pad_vec(be1, W),      # rows 2,3: ln1 gamma/beta
            pad_vec(g2, W), pad_vec(be2, W),      # rows 4,5: ln2 gamma/beta
            pad_vec(bb1, W),                      # row 6: MLP bias 1
            pad_vec(bb2, W),                      # row 7: MLP bias 2   (bug fixed)
        ]
        vecs_l.append(jnp.stack(rows, axis=0).astype(jnp.float32))   # (8, 3*DP)

    packed = {
        'wqkv': jnp.stack(wqkv_l, axis=0),        # (L, DP, 3*DP) bf16
        'wo': jnp.stack(wo_l, axis=0),            # (L, DP, DP)   bf16
        'w1': jnp.stack(w1_l, axis=0),            # (L, DP, FFP)  bf16
        'w2': jnp.stack(w2_l, axis=0),            # (L, FFP, DP)  bf16
        'vecs': jnp.stack(vecs_l, axis=0),        # (L, 8, 3*DP)  f32
        'tok_emb': pad_axis(p['tok_emb'], 1, DP),                   # (VOCAB, DP)
        'pos_emb': pad_axis(p['pos_emb'], 1, DP),                   # (S, DP)
        'lnf': jnp.stack([pad_vec(p['lnfg']), pad_vec(p['lnfb'])], axis=0),  # (2, DP)
        'proj': pad_axis(pad_axis(p['text_projection'], 0, DP), 1, PP).astype(wdt),
    }
    return packed


# --------------------------------------------------------------------------- #
# pallas_call wrapper
# --------------------------------------------------------------------------- #
@jax.jit
def text_clip_forward(packed, text):
    """TextCLIP.forward(text) == model.encode_text(text)."""
    # Plain-JAX glue (toy scale): token-embedding gather + positional add.
    # TODO(synk): at real CLIP widths fuse the tok_emb gather + pos_emb add into
    # the kernel (scalar-prefetch `text`, DMA rows from an ANY-space tok_emb).
    x = (packed['tok_emb'][text] + packed['pos_emb'][None]).reshape(BS, DP)  # (BS, DP) f32

    # EOT one-hot row selector over the batch-folded layout (exact gather).
    eot = jnp.argmax(text, axis=-1)                                   # (B,)
    sel = jax.nn.one_hot(jnp.arange(B) * S + eot, BS, dtype=jnp.float32)  # (B, BS)

    # Block-diagonal causal additive bias (hoisted out of the kernel).
    r = jnp.arange(BS)
    same_seq = (r[:, None] // S) == (r[None, :] // S)
    causal = (r[None, :] % S) <= (r[:, None] % S)
    mask = jnp.where(same_seq & causal, 0.0, -1e30).astype(jnp.float32)   # (BS, BS)

    out = pl.pallas_call(
        text_encoder_kernel,
        out_shape=jax.ShapeDtypeStruct((B, PP), jnp.float32),
        # No grid: one invocation, every operand is a single whole-array VMEM
        # block (DMA'd exactly once).  NOTE: when scaling to real CLIP widths
        # add pltpu.CompilerParams(vmem_limit_bytes=...) and, on v7x, go back
        # to per-layer weight streaming (64 MiB VMEM) / per-TC batch sharding.
    )(x, mask, sel,
      packed['wqkv'], packed['wo'], packed['w1'], packed['w2'], packed['vecs'],
      packed['lnf'], packed['proj'])
    return out[:, :EMBED]                                             # strip lane padding


# --------------------------------------------------------------------------- #
# Pure-JAX f32 reference (same math, unpadded) for a loose numeric check
# --------------------------------------------------------------------------- #
def _layer_norm_ref(x, g, b):
    mu = jnp.mean(x, axis=-1, keepdims=True)
    var = jnp.mean((x - mu) ** 2, axis=-1, keepdims=True)
    return (x - mu) / jnp.sqrt(var + LN_EPS) * g + b


def reference_forward(params, text):
    x = params['tok_emb'][text] + params['pos_emb'][None]            # (B, S, D)
    qi = jnp.arange(S)[:, None]
    ki = jnp.arange(S)[None, :]
    bias = jnp.where(ki <= qi, 0.0, -jnp.inf)
    for (wqkv, bqkv, wo, bo, g1, be1, g2, be2, w1, bb1, w2, bb2) in params['layers']:
        h = _layer_norm_ref(x, g1, be1)
        qkv = h @ wqkv + bqkv
        q, k, v = jnp.split(qkv, 3, axis=-1)
        q = q.reshape(B, S, H, DH).transpose(0, 2, 1, 3)
        k = k.reshape(B, S, H, DH).transpose(0, 2, 1, 3)
        v = v.reshape(B, S, H, DH).transpose(0, 2, 1, 3)
        s = jnp.einsum('bhqd,bhkd->bhqk', q, k) * (DH ** -0.5) + bias
        p = jax.nn.softmax(s, axis=-1)
        ctx = jnp.einsum('bhqk,bhkd->bhqd', p, v).transpose(0, 2, 1, 3).reshape(B, S, D)
        x = x + ctx @ wo + bo
        h2 = _layer_norm_ref(x, g2, be2)
        m = h2 @ w1 + bb1
        m = m * jax.nn.sigmoid(1.702 * m)
        x = x + m @ w2 + bb2
    x = _layer_norm_ref(x, params['lnfg'], params['lnfb'])
    eot = jnp.argmax(text, axis=-1)
    return x[jnp.arange(B), eot] @ params['text_projection']


if __name__ == "__main__":
    key = jax.random.PRNGKey(0)
    k_param, k_text = jax.random.split(key)
    params = init_params(k_param)
    packed = pack_params(params)
    text = jax.random.randint(k_text, (B, S), 0, VOCAB, dtype=jnp.int32)

    out = jax.block_until_ready(text_clip_forward(packed, text))
    assert out.shape == (B, EMBED) and out.dtype == jnp.float32

    ref = reference_forward(params, text)
    max_err = float(jnp.max(jnp.abs(out - ref)))
    assert max_err < 5e-2, f"kernel/reference mismatch: {max_err}"

    print("KERNEL_OK")
</pallas_src>

<mosaic_0001>
module attributes {stable_mosaic.version = 11 : i64} {
  func.func @text_encoder_kernel(%arg0: memref<16x128xf32, #tpu.memory_space<vmem>>, %arg1: memref<16x16xf32, #tpu.memory_space<vmem>>, %arg2: memref<2x16xf32, #tpu.memory_space<vmem>>, %arg3: memref<2x128x384xbf16, #tpu.memory_space<vmem>>, %arg4: memref<2x128x128xbf16, #tpu.memory_space<vmem>>, %arg5: memref<2x128x128xbf16, #tpu.memory_space<vmem>>, %arg6: memref<2x128x128xbf16, #tpu.memory_space<vmem>>, %arg7: memref<2x8x384xf32, #tpu.memory_space<vmem>>, %arg8: memref<2x128xf32, #tpu.memory_space<vmem>>, %arg9: memref<128x128xbf16, #tpu.memory_space<vmem>>, %arg10: memref<2x128xf32, #tpu.memory_space<vmem>>) attributes {dimension_semantics = [], scalar_prefetch = 0 : i64, scratch_operands = 0 : i64, tpu.core_type = #tpu.core_type<tc>} {
    %c0 = arith.constant 0 : index
    %c0_0 = arith.constant 0 : index
    %0 = vector.load %arg0[%c0, %c0_0] : memref<16x128xf32, #tpu.memory_space<vmem>>, vector<16x128xf32>
    %c0_1 = arith.constant 0 : index
    %c0_2 = arith.constant 0 : index
    %1 = vector.load %arg1[%c0_1, %c0_2] : memref<16x16xf32, #tpu.memory_space<vmem>>, vector<16x16xf32>
    %c0_i32 = arith.constant 0 : i32
    %2 = arith.index_cast %c0_i32 : i32 to index
    %c0_3 = arith.constant 0 : index
    %c0_4 = arith.constant 0 : index
    %3 = vector.load %arg7[%2, %c0_3, %c0_4] : memref<2x8x384xf32, #tpu.memory_space<vmem>>, vector<1x8x384xf32>
    %4 = vector.shape_cast %3 : vector<1x8x384xf32> to vector<8x384xf32>
    %5 = vector.extract_strided_slice %4 {offsets = [0, 0], sizes = [1, 384], strides = [1, 1]} : vector<8x384xf32> to vector<1x384xf32>
    %6 = vector.extract_strided_slice %4 {offsets = [1, 0], sizes = [1, 128], strides = [1, 1]} : vector<8x384xf32> to vector<1x128xf32>
    %7 = vector.extract_strided_slice %4 {offsets = [2, 0], sizes = [1, 128], strides = [1, 1]} : vector<8x384xf32> to vector<1x128xf32>
    %8 = vector.extract_strided_slice %4 {offsets = [3, 0], sizes = [1, 128], strides = [1, 1]} : vector<8x384xf32> to vector<1x128xf32>
    %9 = vector.extract_strided_slice %4 {offsets = [4, 0], sizes = [1, 128], strides = [1, 1]} : vector<8x384xf32> to vector<1x128xf32>
    %10 = vector.extract_strided_slice %4 {offsets = [5, 0], sizes = [1, 128], strides = [1, 1]} : vector<8x384xf32> to vector<1x128xf32>
    %11 = vector.extract_strided_slice %4 {offsets = [6, 0], sizes = [1, 128], strides = [1, 1]} : vector<8x384xf32> to vector<1x128xf32>
    %12 = vector.extract_strided_slice %4 {offsets = [7, 0], sizes = [1, 128], strides = [1, 1]} : vector<8x384xf32> to vector<1x128xf32>
    %cst = arith.constant dense<0.000000e+00> : vector<16xf32>
    %13 = vector.multi_reduction <add>, %0, %cst [1] : vector<16x128xf32> to vector<16xf32>
    %14 = vector.shape_cast %13 : vector<16xf32> to vector<16x1xf32>
    %cst_5 = arith.constant 3.125000e-02 : f32
    %15 = vector.broadcast %cst_5 : f32 to vector<16x1xf32>
    %16 = arith.mulf %14, %15 : vector<16x1xf32>
    %17 = arith.mulf %0, %0 : vector<16x128xf32>
    %cst_6 = arith.constant dense<0.000000e+00> : vector<16xf32>
    %18 = vector.multi_reduction <add>, %17, %cst_6 [1] : vector<16x128xf32> to vector<16xf32>
    %19 = vector.shape_cast %18 : vector<16xf32> to vector<16x1xf32>
    %cst_7 = arith.constant 3.125000e-02 : f32
    %20 = vector.broadcast %cst_7 : f32 to vector<16x1xf32>
    %21 = arith.mulf %19, %20 : vector<16x1xf32>
    %22 = arith.mulf %16, %16 : vector<16x1xf32>
    %23 = arith.subf %21, %22 : vector<16x1xf32>
    %24 = vector.broadcast %16 : vector<16x1xf32> to vector<16x128xf32>
    %25 = arith.subf %0, %24 : vector<16x128xf32>
    %cst_8 = arith.constant 9.99999974E-6 : f32
    %26 = vector.broadcast %cst_8 : f32 to vector<16x1xf32>
    %27 = arith.addf %23, %26 : vector<16x1xf32>
    %28 = math.rsqrt %27 : vector<16x1xf32>
    %29 = vector.broadcast %28 : vector<16x1xf32> to vector<16x128xf32>
    %30 = arith.mulf %25, %29 : vector<16x128xf32>
    %31 = vector.broadcast %7 : vector<1x128xf32> to vector<16x128xf32>
    %32 = arith.mulf %30, %31 : vector<16x128xf32>
    %33 = vector.broadcast %8 : vector<1x128xf32> to vector<16x128xf32>
    %34 = arith.addf %32, %33 : vector<16x128xf32>
    %35 = arith.truncf %34 : vector<16x128xf32> to vector<16x128xbf16>
    %36 = arith.index_cast %c0_i32 : i32 to index
    %c0_9 = arith.constant 0 : index
    %c0_10 = arith.constant 0 : index
    %37 = vector.load %arg3[%36, %c0_9, %c0_10] : memref<2x128x384xbf16, #tpu.memory_space<vmem>>, vector<1x128x384xbf16>
    %38 = vector.shape_cast %37 : vector<1x128x384xbf16> to vector<128x384xbf16>
    %cst_11 = arith.constant dense<0.000000e+00> : vector<16x384xf32>
    %39 = tpu.matmul %35, %38, %cst_11 {dimension_numbers = #tpu.dot_dimension_numbers<[1], [0], [0], [1], [0, 0, 1, 1], [], []>} : vector<16x128xbf16>, vector<128x384xbf16>, vector<16x384xf32> -> vector<16x384xf32>
    %40 = vector.broadcast %5 : vector<1x384xf32> to vector<16x384xf32>
    %41 = arith.addf %39, %40 : vector<16x384xf32>
    %42 = vector.extract_strided_slice %41 {offsets = [0, 0], sizes = [16, 32], strides = [1, 1]} : vector<16x384xf32> to vector<16x32xf32>
    %43 = arith.truncf %42 : vector<16x32xf32> to vector<16x32xbf16>
    %44 = vector.extract_strided_slice %41 {offsets = [0, 128], sizes = [16, 32], strides = [1, 1]} : vector<16x384xf32> to vector<16x32xf32>
    %45 = arith.truncf %44 : vector<16x32xf32> to vector<16x32xbf16>
    %46 = vector.extract_strided_slice %41 {offsets = [0, 256], sizes = [16, 32], strides = [1, 1]} : vector<16x384xf32> to vector<16x32xf32>
    %47 = arith.truncf %46 : vector<16x32xf32> to vector<16x32xbf16>
    %cst_12 = arith.constant dense<0.000000e+00> : vector<16x16xf32>
    %48 = tpu.matmul %43, %45, %cst_12 {dimension_numbers = #tpu.dot_dimension_numbers<[1], [1], [0], [0], [0, 0, 1, 0], [], []>} : vector<16x32xbf16>, vector<16x32xbf16>, vector<16x16xf32> -> vector<16x16xf32>
    %49 = arith.addf %48, %1 : vector<16x16xf32>
    %cst_13 = arith.constant dense<0xFF800000> : vector<16xf32>
    %50 = vector.multi_reduction <maximumf>, %49, %cst_13 [1] : vector<16x16xf32> to vector<16xf32>
    %51 = vector.shape_cast %50 : vector<16xf32> to vector<16x1xf32>
    %52 = vector.broadcast %51 : vector<16x1xf32> to vector<16x16xf32>
    %53 = arith.subf %49, %52 : vector<16x16xf32>
    %54 = math.exp %53 : vector<16x16xf32>
    %cst_14 = arith.constant dense<0.000000e+00> : vector<16xf32>
    %55 = vector.multi_reduction <add>, %54, %cst_14 [1] : vector<16x16xf32> to vector<16xf32>
    %56 = vector.shape_cast %55 : vector<16xf32> to vector<16x1xf32>
    %57 = tpu.reciprocal %56 {approx = true} : vector<16x1xf32> -> vector<16x1xf32>
    %58 = vector.broadcast %57 : vector<16x1xf32> to vector<16x16xf32>
    %59 = arith.mulf %54, %58 : vector<16x16xf32>
    %60 = arith.truncf %59 : vector<16x16xf32> to vector<16x16xbf16>
    %cst_15 = arith.constant dense<0.000000e+00> : vector<16x32xf32>
    %61 = tpu.matmul %60, %47, %cst_15 {dimension_numbers = #tpu.dot_dimension_numbers<[1], [0], [0], [1], [0, 0, 1, 1], [], []>} : vector<16x16xbf16>, vector<16x32xbf16>, vector<16x32xf32> -> vector<16x32xf32>
    %62 = vector.extract_strided_slice %41 {offsets = [0, 32], sizes = [16, 32], strides = [1, 1]} : vector<16x384xf32> to vector<16x32xf32>
    %63 = arith.truncf %62 : vector<16x32xf32> to vector<16x32xbf16>
    %64 = vector.extract_strided_slice %41 {offsets = [0, 160], sizes = [16, 32], strides = [1, 1]} : vector<16x384xf32> to vector<16x32xf32>
    %65 = arith.truncf %64 : vector<16x32xf32> to vector<16x32xbf16>
    %66 = vector.extract_strided_slice %41 {offsets = [0, 288], sizes = [16, 32], strides = [1, 1]} : vector<16x384xf32> to vector<16x32xf32>
    %67 = arith.truncf %66 : vector<16x32xf32> to vector<16x32xbf16>
    %cst_16 = arith.constant dense<0.000000e+00> : vector<16x16xf32>
    %68 = tpu.matmul %63, %65, %cst_16 {dimension_numbers = #tpu.dot_dimension_numbers<[1], [1], [0], [0], [0, 0, 1, 0], [], []>} : vector<16x32xbf16>, vector<16x32xbf16>, vector<16x16xf32> -> vector<16x16xf32>
    %69 = arith.addf %68, %1 : vector<16x16xf32>
    %cst_17 = arith.constant dense<0xFF800000> : vector<16xf32>
    %70 = vector.multi_reduction <maximumf>, %69, %cst_17 [1] : vector<16x16xf32> to vector<16xf32>
    %71 = vector.shape_cast %70 : vector<16xf32> to vector<16x1xf32>
    %72 = vector.broadcast %71 : vector<16x1xf32> to vector<16x16xf32>
    %73 = arith.subf %69, %72 : vector<16x16xf32>
    %74 = math.exp %73 : vector<16x16xf32>
    %cst_18 = arith.constant dense<0.000000e+00> : vector<16xf32>
    %75 = vector.multi_reduction <add>, %74, %cst_18 [1] : vector<16x16xf32> to vector<16xf32>
    %76 = vector.shape_cast %75 : vector<16xf32> to vector<16x1xf32>
    %77 = tpu.reciprocal %76 {approx = true} : vector<16x1xf32> -> vector<16x1xf32>
    %78 = vector.broadcast %77 : vector<16x1xf32> to vector<16x16xf32>
    %79 = arith.mulf %74, %78 : vector<16x16xf32>
    %80 = arith.truncf %79 : vector<16x16xf32> to vector<16x16xbf16>
    %cst_19 = arith.constant dense<0.000000e+00> : vector<16x32xf32>
    %81 = tpu.matmul %80, %67, %cst_19 {dimension_numbers = #tpu.dot_dimension_numbers<[1], [0], [0], [1], [0, 0, 1, 1], [], []>} : vector<16x16xbf16>, vector<16x32xbf16>, vector<16x32xf32> -> vector<16x32xf32>
    %82 = vector.extract_strided_slice %41 {offsets = [0, 64], sizes = [16, 32], strides = [1, 1]} : vector<16x384xf32> to vector<16x32xf32>
    %83 = arith.truncf %82 : vector<16x32xf32> to vector<16x32xbf16>
    %84 = vector.extract_strided_slice %41 {offsets = [0, 192], sizes = [16, 32], strides = [1, 1]} : vector<16x384xf32> to vector<16x32xf32>
    %85 = arith.truncf %84 : vector<16x32xf32> to vector<16x32xbf16>
    %86 = vector.extract_strided_slice %41 {offsets = [0, 320], sizes = [16, 32], strides = [1, 1]} : vector<16x384xf32> to vector<16x32xf32>
    %87 = arith.truncf %86 : vector<16x32xf32> to vector<16x32xbf16>
    %cst_20 = arith.constant dense<0.000000e+00> : vector<16x16xf32>
    %88 = tpu.matmul %83, %85, %cst_20 {dimension_numbers = #tpu.dot_dimension_numbers<[1], [1], [0], [0], [0, 0, 1, 0], [], []>} : vector<16x32xbf16>, vector<16x32xbf16>, vector<16x16xf32> -> vector<16x16xf32>
    %89 = arith.addf %88, %1 : vector<16x16xf32>
    %cst_21 = arith.constant dense<0xFF800000> : vector<16xf32>
    %90 = vector.multi_reduction <maximumf>, %89, %cst_21 [1] : vector<16x16xf32> to vector<16xf32>
    %91 = vector.shape_cast %90 : vector<16xf32> to vector<16x1xf32>
    %92 = vector.broadcast %91 : vector<16x1xf32> to vector<16x16xf32>
    %93 = arith.subf %89, %92 : vector<16x16xf32>
    %94 = math.exp %93 : vector<16x16xf32>
    %cst_22 = arith.constant dense<0.000000e+00> : vector<16xf32>
    %95 = vector.multi_reduction <add>, %94, %cst_22 [1] : vector<16x16xf32> to vector<16xf32>
    %96 = vector.shape_cast %95 : vector<16xf32> to vector<16x1xf32>
    %97 = tpu.reciprocal %96 {approx = true} : vector<16x1xf32> -> vector<16x1xf32>
    %98 = vector.broadcast %97 : vector<16x1xf32> to vector<16x16xf32>
    %99 = arith.mulf %94, %98 : vector<16x16xf32>
    %100 = arith.truncf %99 : vector<16x16xf32> to vector<16x16xbf16>
    %cst_23 = arith.constant dense<0.000000e+00> : vector<16x32xf32>
    %101 = tpu.matmul %100, %87, %cst_23 {dimension_numbers = #tpu.dot_dimension_numbers<[1], [0], [0], [1], [0, 0, 1, 1], [], []>} : vector<16x16xbf16>, vector<16x32xbf16>, vector<16x32xf32> -> vector<16x32xf32>
    %102 = vector.extract_strided_slice %41 {offsets = [0, 96], sizes = [16, 32], strides = [1, 1]} : vector<16x384xf32> to vector<16x32xf32>
    %103 = arith.truncf %102 : vector<16x32xf32> to vector<16x32xbf16>
    %104 = vector.extract_strided_slice %41 {offsets = [0, 224], sizes = [16, 32], strides = [1, 1]} : vector<16x384xf32> to vector<16x32xf32>
    %105 = arith.truncf %104 : vector<16x32xf32> to vector<16x32xbf16>
    %106 = vector.extract_strided_slice %41 {offsets = [0, 352], sizes = [16, 32], strides = [1, 1]} : vector<16x384xf32> to vector<16x32xf32>
    %107 = arith.truncf %106 : vector<16x32xf32> to vector<16x32xbf16>
    %cst_24 = arith.constant dense<0.000000e+00> : vector<16x16xf32>
    %108 = tpu.matmul %103, %105, %cst_24 {dimension_numbers = #tpu.dot_dimension_numbers<[1], [1], [0], [0], [0, 0, 1, 0], [], []>} : vector<16x32xbf16>, vector<16x32xbf16>, vector<16x16xf32> -> vector<16x16xf32>
    %109 = arith.addf %108, %1 : vector<16x16xf32>
    %cst_25 = arith.constant dense<0xFF800000> : vector<16xf32>
    %110 = vector.multi_reduction <maximumf>, %109, %cst_25 [1] : vector<16x16xf32> to vector<16xf32>
    %111 = vector.shape_cast %110 : vector<16xf32> to vector<16x1xf32>
    %112 = vector.broadcast %111 : vector<16x1xf32> to vector<16x16xf32>
    %113 = arith.subf %109, %112 : vector<16x16xf32>
    %114 = math.exp %113 : vector<16x16xf32>
    %cst_26 = arith.constant dense<0.000000e+00> : vector<16xf32>
    %115 = vector.multi_reduction <add>, %114, %cst_26 [1] : vector<16x16xf32> to vector<16xf32>
    %116 = vector.shape_cast %115 : vector<16xf32> to vector<16x1xf32>
    %117 = tpu.reciprocal %116 {approx = true} : vector<16x1xf32> -> vector<16x1xf32>
    %118 = vector.broadcast %117 : vector<16x1xf32> to vector<16x16xf32>
    %119 = arith.mulf %114, %118 : vector<16x16xf32>
    %120 = arith.truncf %119 : vector<16x16xf32> to vector<16x16xbf16>
    %cst_27 = arith.constant dense<0.000000e+00> : vector<16x32xf32>
    %121 = tpu.matmul %120, %107, %cst_27 {dimension_numbers = #tpu.dot_dimension_numbers<[1], [0], [0], [1], [0, 0, 1, 1], [], []>} : vector<16x16xbf16>, vector<16x32xbf16>, vector<16x32xf32> -> vector<16x32xf32>
    %122 = tpu.concatenate %61, %81, %101, %121 in 1 : vector<16x32xf32>, vector<16x32xf32>, vector<16x32xf32>, vector<16x32xf32> -> vector<16x128xf32>
    %123 = arith.truncf %122 : vector<16x128xf32> to vector<16x128xbf16>
    %124 = arith.index_cast %c0_i32 : i32 to index
    %c0_28 = arith.constant 0 : index
    %c0_29 = arith.constant 0 : index
    %125 = vector.load %arg4[%124, %c0_28, %c0_29] : memref<2x128x128xbf16, #tpu.memory_space<vmem>>, vector<1x128x128xbf16>
    %126 = vector.shape_cast %125 : vector<1x128x128xbf16> to vector<128x128xbf16>
    %cst_30 = arith.constant dense<0.000000e+00> : vector<16x128xf32>
    %127 = tpu.matmul %123, %126, %cst_30 {dimension_numbers = #tpu.dot_dimension_numbers<[1], [0], [0], [1], [0, 0, 1, 1], [], []>} : vector<16x128xbf16>, vector<128x128xbf16>, vector<16x128xf32> -> vector<16x128xf32>
    %128 = vector.broadcast %6 : vector<1x128xf32> to vector<16x128xf32>
    %129 = arith.addf %127, %128 : vector<16x128xf32>
    %130 = arith.addf %0, %129 : vector<16x128xf32>
    %cst_31 = arith.constant dense<0.000000e+00> : vector<16xf32>
    %131 = vector.multi_reduction <add>, %130, %cst_31 [1] : vector<16x128xf32> to vector<16xf32>
    %132 = vector.shape_cast %131 : vector<16xf32> to vector<16x1xf32>
    %cst_32 = arith.constant 3.125000e-02 : f32
    %133 = vector.broadcast %cst_32 : f32 to vector<16x1xf32>
    %134 = arith.mulf %132, %133 : vector<16x1xf32>
    %135 = arith.mulf %130, %130 : vector<16x128xf32>
    %cst_33 = arith.constant dense<0.000000e+00> : vector<16xf32>
    %136 = vector.multi_reduction <add>, %135, %cst_33 [1] : vector<16x128xf32> to vector<16xf32>
    %137 = vector.shape_cast %136 : vector<16xf32> to vector<16x1xf32>
    %cst_34 = arith.constant 3.125000e-02 : f32
    %138 = vector.broadcast %cst_34 : f32 to vector<16x1xf32>
    %139 = arith.mulf %137, %138 : vector<16x1xf32>
    %140 = arith.mulf %134, %134 : vector<16x1xf32>
    %141 = arith.subf %139, %140 : vector<16x1xf32>
    %142 = vector.broadcast %134 : vector<16x1xf32> to vector<16x128xf32>
    %143 = arith.subf %130, %142 : vector<16x128xf32>
    %cst_35 = arith.constant 9.99999974E-6 : f32
    %144 = vector.broadcast %cst_35 : f32 to vector<16x1xf32>
    %145 = arith.addf %141, %144 : vector<16x1xf32>
    %146 = math.rsqrt %145 : vector<16x1xf32>
    %147 = vector.broadcast %146 : vector<16x1xf32> to vector<16x128xf32>
    %148 = arith.mulf %143, %147 : vector<16x128xf32>
    %149 = vector.broadcast %9 : vector<1x128xf32> to vector<16x128xf32>
    %150 = arith.mulf %148, %149 : vector<16x128xf32>
    %151 = vector.broadcast %10 : vector<1x128xf32> to vector<16x128xf32>
    %152 = arith.addf %150, %151 : vector<16x128xf32>
    %153 = arith.truncf %152 : vector<16x128xf32> to vector<16x128xbf16>
    %154 = arith.index_cast %c0_i32 : i32 to index
    %c0_36 = arith.constant 0 : index
    %c0_37 = arith.constant 0 : index
    %155 = vector.load %arg5[%154, %c0_36, %c0_37] : memref<2x128x128xbf16, #tpu.memory_space<vmem>>, vector<1x128x128xbf16>
    %156 = vector.shape_cast %155 : vector<1x128x128xbf16> to vector<128x128xbf16>
    %cst_38 = arith.constant dense<0.000000e+00> : vector<16x128xf32>
    %157 = tpu.matmul %153, %156, %cst_38 {dimension_numbers = #tpu.dot_dimension_numbers<[1], [0], [0], [1], [0, 0, 1, 1], [], []>} : vector<16x128xbf16>, vector<128x128xbf16>, vector<16x128xf32> -> vector<16x128xf32>
    %158 = vector.broadcast %11 : vector<1x128xf32> to vector<16x128xf32>
    %159 = arith.addf %157, %158 : vector<16x128xf32>
    %cst_39 = arith.constant 1.702000e+00 : f32
    %160 = vector.broadcast %cst_39 : f32 to vector<16x128xf32>
    %161 = arith.mulf %160, %159 : vector<16x128xf32>
    %162 = arith.negf %161 : vector<16x128xf32>
    %163 = math.exp %162 : vector<16x128xf32>
    %cst_40 = arith.constant 1.000000e+00 : f32
    %164 = vector.broadcast %cst_40 : f32 to vector<16x128xf32>
    %165 = arith.addf %164, %163 : vector<16x128xf32>
    %166 = arith.divf %164, %165 : vector<16x128xf32>
    %167 = arith.mulf %159, %166 : vector<16x128xf32>
    %168 = arith.truncf %167 : vector<16x128xf32> to vector<16x128xbf16>
    %169 = arith.index_cast %c0_i32 : i32 to index
    %c0_41 = arith.constant 0 : index
    %c0_42 = arith.constant 0 : index
    %170 = vector.load %arg6[%169, %c0_41, %c0_42] : memref<2x128x128xbf16, #tpu.memory_space<vmem>>, vector<1x128x128xbf16>
    %171 = vector.shape_cast %170 : vector<1x128x128xbf16> to vector<128x128xbf16>
    %cst_43 = arith.constant dense<0.000000e+00> : vector<16x128xf32>
    %172 = tpu.matmul %168, %171, %cst_43 {dimension_numbers = #tpu.dot_dimension_numbers<[1], [0], [0], [1], [0, 0, 1, 1], [], []>} : vector<16x128xbf16>, vector<128x128xbf16>, vector<16x128xf32> -> vector<16x128xf32>
    %173 = vector.broadcast %12 : vector<1x128xf32> to vector<16x128xf32>
    %174 = arith.addf %172, %173 : vector<16x128xf32>
    %175 = arith.addf %130, %174 : vector<16x128xf32>
    %c1_i32 = arith.constant 1 : i32
    %176 = arith.index_cast %c1_i32 : i32 to index
    %c0_44 = arith.constant 0 : index
    %c0_45 = arith.constant 0 : index
    %177 = vector.load %arg7[%176, %c0_44, %c0_45] : memref<2x8x384xf32, #tpu.memory_space<vmem>>, vector<1x8x384xf32>
    %178 = vector.shape_cast %177 : vector<1x8x384xf32> to vector<8x384xf32>
    %179 = vector.extract_strided_slice %178 {offsets = [0, 0], sizes = [1, 384], strides = [1, 1]} : vector<8x384xf32> to vector<1x384xf32>
    %180 = vector.extract_strided_slice %178 {offsets = [1, 0], sizes = [1, 128], strides = [1, 1]} : vector<8x384xf32> to vector<1x128xf32>
    %181 = vector.extract_strided_slice %178 {offsets = [2, 0], sizes = [1, 128], strides = [1, 1]} : vector<8x384xf32> to vector<1x128xf32>
    %182 = vector.extract_strided_slice %178 {offsets = [3, 0], sizes = [1, 128], strides = [1, 1]} : vector<8x384xf32> to vector<1x128xf32>
    %183 = vector.extract_strided_slice %178 {offsets = [4, 0], sizes = [1, 128], strides = [1, 1]} : vector<8x384xf32> to vector<1x128xf32>
    %184 = vector.extract_strided_slice %178 {offsets = [5, 0], sizes = [1, 128], strides = [1, 1]} : vector<8x384xf32> to vector<1x128xf32>
    %185 = vector.extract_strided_slice %178 {offsets = [6, 0], sizes = [1, 128], strides = [1, 1]} : vector<8x384xf32> to vector<1x128xf32>
    %186 = vector.extract_strided_slice %178 {offsets = [7, 0], sizes = [1, 128], strides = [1, 1]} : vector<8x384xf32> to vector<1x128xf32>
    %cst_46 = arith.constant dense<0.000000e+00> : vector<16xf32>
    %187 = vector.multi_reduction <add>, %175, %cst_46 [1] : vector<16x128xf32> to vector<16xf32>
    %188 = vector.shape_cast %187 : vector<16xf32> to vector<16x1xf32>
    %cst_47 = arith.constant 3.125000e-02 : f32
    %189 = vector.broadcast %cst_47 : f32 to vector<16x1xf32>
    %190 = arith.mulf %188, %189 : vector<16x1xf32>
    %191 = arith.mulf %175, %175 : vector<16x128xf32>
    %cst_48 = arith.constant dense<0.000000e+00> : vector<16xf32>
    %192 = vector.multi_reduction <add>, %191, %cst_48 [1] : vector<16x128xf32> to vector<16xf32>
    %193 = vector.shape_cast %192 : vector<16xf32> to vector<16x1xf32>
    %cst_49 = arith.constant 3.125000e-02 : f32
    %194 = vector.broadcast %cst_49 : f32 to vector<16x1xf32>
    %195 = arith.mulf %193, %194 : vector<16x1xf32>
    %196 = arith.mulf %190, %190 : vector<16x1xf32>
    %197 = arith.subf %195, %196 : vector<16x1xf32>
    %198 = vector.broadcast %190 : vector<16x1xf32> to vector<16x128xf32>
    %199 = arith.subf %175, %198 : vector<16x128xf32>
    %cst_50 = arith.constant 9.99999974E-6 : f32
    %200 = vector.broadcast %cst_50 : f32 to vector<16x1xf32>
    %201 = arith.addf %197, %200 : vector<16x1xf32>
    %202 = math.rsqrt %201 : vector<16x1xf32>
    %203 = vector.broadcast %202 : vector<16x1xf32> to vector<16x128xf32>
    %204 = arith.mulf %199, %203 : vector<16x128xf32>
    %205 = vector.broadcast %181 : vector<1x128xf32> to vector<16x128xf32>
    %206 = arith.mulf %204, %205 : vector<16x128xf32>
    %207 = vector.broadcast %182 : vector<1x128xf32> to vector<16x128xf32>
    %208 = arith.addf %206, %207 : vector<16x128xf32>
    %209 = arith.truncf %208 : vector<16x128xf32> to vector<16x128xbf16>
    %210 = arith.index_cast %c1_i32 : i32 to index
    %c0_51 = arith.constant 0 : index
    %c0_52 = arith.constant 0 : index
    %211 = vector.load %arg3[%210, %c0_51, %c0_52] : memref<2x128x384xbf16, #tpu.memory_space<vmem>>, vector<1x128x384xbf16>
    %212 = vector.shape_cast %211 : vector<1x128x384xbf16> to vector<128x384xbf16>
    %cst_53 = arith.constant dense<0.000000e+00> : vector<16x384xf32>
    %213 = tpu.matmul %209, %212, %cst_53 {dimension_numbers = #tpu.dot_dimension_numbers<[1], [0], [0], [1], [0, 0, 1, 1], [], []>} : vector<16x128xbf16>, vector<128x384xbf16>, vector<16x384xf32> -> vector<16x384xf32>
    %214 = vector.broadcast %179 : vector<1x384xf32> to vector<16x384xf32>
    %215 = arith.addf %213, %214 : vector<16x384xf32>
    %216 = vector.extract_strided_slice %215 {offsets = [0, 0], sizes = [16, 32], strides = [1, 1]} : vector<16x384xf32> to vector<16x32xf32>
    %217 = arith.truncf %216 : vector<16x32xf32> to vector<16x32xbf16>
    %218 = vector.extract_strided_slice %215 {offsets = [0, 128], sizes = [16, 32], strides = [1, 1]} : vector<16x384xf32> to vector<16x32xf32>
    %219 = arith.truncf %218 : vector<16x32xf32> to vector<16x32xbf16>
    %220 = vector.extract_strided_slice %215 {offsets = [0, 256], sizes = [16, 32], strides = [1, 1]} : vector<16x384xf32> to vector<16x32xf32>
    %221 = arith.truncf %220 : vector<16x32xf32> to vector<16x32xbf16>
    %cst_54 = arith.constant dense<0.000000e+00> : vector<16x16xf32>
    %222 = tpu.matmul %217, %219, %cst_54 {dimension_numbers = #tpu.dot_dimension_numbers<[1], [1], [0], [0], [0, 0, 1, 0], [], []>} : vector<16x32xbf16>, vector<16x32xbf16>, vector<16x16xf32> -> vector<16x16xf32>
    %223 = arith.addf %222, %1 : vector<16x16xf32>
    %cst_55 = arith.constant dense<0xFF800000> : vector<16xf32>
    %224 = vector.multi_reduction <maximumf>, %223, %cst_55 [1] : vector<16x16xf32> to vector<16xf32>
    %225 = vector.shape_cast %224 : vector<16xf32> to vector<16x1xf32>
    %226 = vector.broadcast %225 : vector<16x1xf32> to vector<16x16xf32>
    %227 = arith.subf %223, %226 : vector<16x16xf32>
    %228 = math.exp %227 : vector<16x16xf32>
    %cst_56 = arith.constant dense<0.000000e+00> : vector<16xf32>
    %229 = vector.multi_reduction <add>, %228, %cst_56 [1] : vector<16x16xf32> to vector<16xf32>
    %230 = vector.shape_cast %229 : vector<16xf32> to vector<16x1xf32>
    %231 = tpu.reciprocal %230 {approx = true} : vector<16x1xf32> -> vector<16x1xf32>
    %232 = vector.broadcast %231 : vector<16x1xf32> to vector<16x16xf32>
    %233 = arith.mulf %228, %232 : vector<16x16xf32>
    %234 = arith.truncf %233 : vector<16x16xf32> to vector<16x16xbf16>
    %cst_57 = arith.constant dense<0.000000e+00> : vector<16x32xf32>
    %235 = tpu.matmul %234, %221, %cst_57 {dimension_numbers = #tpu.dot_dimension_numbers<[1], [0], [0], [1], [0, 0, 1, 1], [], []>} : vector<16x16xbf16>, vector<16x32xbf16>, vector<16x32xf32> -> vector<16x32xf32>
    %236 = vector.extract_strided_slice %215 {offsets = [0, 32], sizes = [16, 32], strides = [1, 1]} : vector<16x384xf32> to vector<16x32xf32>
    %237 = arith.truncf %236 : vector<16x32xf32> to vector<16x32xbf16>
    %238 = vector.extract_strided_slice %215 {offsets = [0, 160], sizes = [16, 32], strides = [1, 1]} : vector<16x384xf32> to vector<16x32xf32>
    %239 = arith.truncf %238 : vector<16x32xf32> to vector<16x32xbf16>
    %240 = vector.extract_strided_slice %215 {offsets = [0, 288], sizes = [16, 32], strides = [1, 1]} : vector<16x384xf32> to vector<16x32xf32>
    %241 = arith.truncf %240 : vector<16x32xf32> to vector<16x32xbf16>
    %cst_58 = arith.constant dense<0.000000e+00> : vector<16x16xf32>
    %242 = tpu.matmul %237, %239, %cst_58 {dimension_numbers = #tpu.dot_dimension_numbers<[1], [1], [0], [0], [0, 0, 1, 0], [], []>} : vector<16x32xbf16>, vector<16x32xbf16>, vector<16x16xf32> -> vector<16x16xf32>
    %243 = arith.addf %242, %1 : vector<16x16xf32>
    %cst_59 = arith.constant dense<0xFF800000> : vector<16xf32>
    %244 = vector.multi_reduction <maximumf>, %243, %cst_59 [1] : vector<16x16xf32> to vector<16xf32>
    %245 = vector.shape_cast %244 : vector<16xf32> to vector<16x1xf32>
    %246 = vector.broadcast %245 : vector<16x1xf32> to vector<16x16xf32>
    %247 = arith.subf %243, %246 : vector<16x16xf32>
    %248 = math.exp %247 : vector<16x16xf32>
    %cst_60 = arith.constant dense<0.000000e+00> : vector<16xf32>
    %249 = vector.multi_reduction <add>, %248, %cst_60 [1] : vector<16x16xf32> to vector<16xf32>
    %250 = vector.shape_cast %249 : vector<16xf32> to vector<16x1xf32>
    %251 = tpu.reciprocal %250 {approx = true} : vector<16x1xf32> -> vector<16x1xf32>
    %252 = vector.broadcast %251 : vector<16x1xf32> to vector<16x16xf32>
    %253 = arith.mulf %248, %252 : vector<16x16xf32>
    %254 = arith.truncf %253 : vector<16x16xf32> to vector<16x16xbf16>
    %cst_61 = arith.constant dense<0.000000e+00> : vector<16x32xf32>
    %255 = tpu.matmul %254, %241, %cst_61 {dimension_numbers = #tpu.dot_dimension_numbers<[1], [0], [0], [1], [0, 0, 1, 1], [], []>} : vector<16x16xbf16>, vector<16x32xbf16>, vector<16x32xf32> -> vector<16x32xf32>
    %256 = vector.extract_strided_slice %215 {offsets = [0, 64], sizes = [16, 32], strides = [1, 1]} : vector<16x384xf32> to vector<16x32xf32>
    %257 = arith.truncf %256 : vector<16x32xf32> to vector<16x32xbf16>
    %258 = vector.extract_strided_slice %215 {offsets = [0, 192], sizes = [16, 32], strides = [1, 1]} : vector<16x384xf32> to vector<16x32xf32>
    %259 = arith.truncf %258 : vector<16x32xf32> to vector<16x32xbf16>
    %260 = vector.extract_strided_slice %215 {offsets = [0, 320], sizes = [16, 32], strides = [1, 1]} : vector<16x384xf32> to vector<16x32xf32>
    %261 = arith.truncf %260 : vector<16x32xf32> to vector<16x32xbf16>
    %cst_62 = arith.constant dense<0.000000e+00> : vector<16x16xf32>
    %262 = tpu.matmul %257, %259, %cst_62 {dimension_numbers = #tpu.dot_dimension_numbers<[1], [1], [0], [0], [0, 0, 1, 0], [], []>} : vector<16x32xbf16>, vector<16x32xbf16>, vector<16x16xf32> -> vector<16x16xf32>
    %263 = arith.addf %262, %1 : vector<16x16xf32>
    %cst_63 = arith.constant dense<0xFF800000> : vector<16xf32>
    %264 = vector.multi_reduction <maximumf>, %263, %cst_63 [1] : vector<16x16xf32> to vector<16xf32>
    %265 = vector.shape_cast %264 : vector<16xf32> to vector<16x1xf32>
    %266 = vector.broadcast %265 : vector<16x1xf32> to vector<16x16xf32>
    %267 = arith.subf %263, %266 : vector<16x16xf32>
    %268 = math.exp %267 : vector<16x16xf32>
    %cst_64 = arith.constant dense<0.000000e+00> : vector<16xf32>
    %269 = vector.multi_reduction <add>, %268, %cst_64 [1] : vector<16x16xf32> to vector<16xf32>
    %270 = vector.shape_cast %269 : vector<16xf32> to vector<16x1xf32>
    %271 = tpu.reciprocal %270 {approx = true} : vector<16x1xf32> -> vector<16x1xf32>
    %272 = vector.broadcast %271 : vector<16x1xf32> to vector<16x16xf32>
    %273 = arith.mulf %268, %272 : vector<16x16xf32>
    %274 = arith.truncf %273 : vector<16x16xf32> to vector<16x16xbf16>
    %cst_65 = arith.constant dense<0.000000e+00> : vector<16x32xf32>
    %275 = tpu.matmul %274, %261, %cst_65 {dimension_numbers = #tpu.dot_dimension_numbers<[1], [0], [0], [1], [0, 0, 1, 1], [], []>} : vector<16x16xbf16>, vector<16x32xbf16>, vector<16x32xf32> -> vector<16x32xf32>
    %276 = vector.extract_strided_slice %215 {offsets = [0, 96], sizes = [16, 32], strides = [1, 1]} : vector<16x384xf32> to vector<16x32xf32>
    %277 = arith.truncf %276 : vector<16x32xf32> to vector<16x32xbf16>
    %278 = vector.extract_strided_slice %215 {offsets = [0, 224], sizes = [16, 32], strides = [1, 1]} : vector<16x384xf32> to vector<16x32xf32>
    %279 = arith.truncf %278 : vector<16x32xf32> to vector<16x32xbf16>
    %280 = vector.extract_strided_slice %215 {offsets = [0, 352], sizes = [16, 32], strides = [1, 1]} : vector<16x384xf32> to vector<16x32xf32>
    %281 = arith.truncf %280 : vector<16x32xf32> to vector<16x32xbf16>
    %cst_66 = arith.constant dense<0.000000e+00> : vector<16x16xf32>
    %282 = tpu.matmul %277, %279, %cst_66 {dimension_numbers = #tpu.dot_dimension_numbers<[1], [1], [0], [0], [0, 0, 1, 0], [], []>} : vector<16x32xbf16>, vector<16x32xbf16>, vector<16x16xf32> -> vector<16x16xf32>
    %283 = arith.addf %282, %1 : vector<16x16xf32>
    %cst_67 = arith.constant dense<0xFF800000> : vector<16xf32>
    %284 = vector.multi_reduction <maximumf>, %283, %cst_67 [1] : vector<16x16xf32> to vector<16xf32>
    %285 = vector.shape_cast %284 : vector<16xf32> to vector<16x1xf32>
    %286 = vector.broadcast %285 : vector<16x1xf32> to vector<16x16xf32>
    %287 = arith.subf %283, %286 : vector<16x16xf32>
    %288 = math.exp %287 : vector<16x16xf32>
    %cst_68 = arith.constant dense<0.000000e+00> : vector<16xf32>
    %289 = vector.multi_reduction <add>, %288, %cst_68 [1] : vector<16x16xf32> to vector<16xf32>
    %290 = vector.shape_cast %289 : vector<16xf32> to vector<16x1xf32>
    %291 = tpu.reciprocal %290 {approx = true} : vector<16x1xf32> -> vector<16x1xf32>
    %292 = vector.broadcast %291 : vector<16x1xf32> to vector<16x16xf32>
    %293 = arith.mulf %288, %292 : vector<16x16xf32>
    %294 = arith.truncf %293 : vector<16x16xf32> to vector<16x16xbf16>
    %cst_69 = arith.constant dense<0.000000e+00> : vector<16x32xf32>
    %295 = tpu.matmul %294, %281, %cst_69 {dimension_numbers = #tpu.dot_dimension_numbers<[1], [0], [0], [1], [0, 0, 1, 1], [], []>} : vector<16x16xbf16>, vector<16x32xbf16>, vector<16x32xf32> -> vector<16x32xf32>
    %296 = tpu.concatenate %235, %255, %275, %295 in 1 : vector<16x32xf32>, vector<16x32xf32>, vector<16x32xf32>, vector<16x32xf32> -> vector<16x128xf32>
    %297 = arith.truncf %296 : vector<16x128xf32> to vector<16x128xbf16>
    %298 = arith.index_cast %c1_i32 : i32 to index
    %c0_70 = arith.constant 0 : index
    %c0_71 = arith.constant 0 : index
    %299 = vector.load %arg4[%298, %c0_70, %c0_71] : memref<2x128x128xbf16, #tpu.memory_space<vmem>>, vector<1x128x128xbf16>
    %300 = vector.shape_cast %299 : vector<1x128x128xbf16> to vector<128x128xbf16>
    %cst_72 = arith.constant dense<0.000000e+00> : vector<16x128xf32>
    %301 = tpu.matmul %297, %300, %cst_72 {dimension_numbers = #tpu.dot_dimension_numbers<[1], [0], [0], [1], [0, 0, 1, 1], [], []>} : vector<16x128xbf16>, vector<128x128xbf16>, vector<16x128xf32> -> vector<16x128xf32>
    %302 = vector.broadcast %180 : vector<1x128xf32> to vector<16x128xf32>
    %303 = arith.addf %301, %302 : vector<16x128xf32>
    %304 = arith.addf %175, %303 : vector<16x128xf32>
    %cst_73 = arith.constant dense<0.000000e+00> : vector<16xf32>
    %305 = vector.multi_reduction <add>, %304, %cst_73 [1] : vector<16x128xf32> to vector<16xf32>
    %306 = vector.shape_cast %305 : vector<16xf32> to vector<16x1xf32>
    %cst_74 = arith.constant 3.125000e-02 : f32
    %307 = vector.broadcast %cst_74 : f32 to vector<16x1xf32>
    %308 = arith.mulf %306, %307 : vector<16x1xf32>
    %309 = arith.mulf %304, %304 : vector<16x128xf32>
    %cst_75 = arith.constant dense<0.000000e+00> : vector<16xf32>
    %310 = vector.multi_reduction <add>, %309, %cst_75 [1] : vector<16x128xf32> to vector<16xf32>
    %311 = vector.shape_cast %310 : vector<16xf32> to vector<16x1xf32>
    %cst_76 = arith.constant 3.125000e-02 : f32
    %312 = vector.broadcast %cst_76 : f32 to vector<16x1xf32>
    %313 = arith.mulf %311, %312 : vector<16x1xf32>
    %314 = arith.mulf %308, %308 : vector<16x1xf32>
    %315 = arith.subf %313, %314 : vector<16x1xf32>
    %316 = vector.broadcast %308 : vector<16x1xf32> to vector<16x128xf32>
    %317 = arith.subf %304, %316 : vector<16x128xf32>
    %cst_77 = arith.constant 9.99999974E-6 : f32
    %318 = vector.broadcast %cst_77 : f32 to vector<16x1xf32>
    %319 = arith.addf %315, %318 : vector<16x1xf32>
    %320 = math.rsqrt %319 : vector<16x1xf32>
    %321 = vector.broadcast %320 : vector<16x1xf32> to vector<16x128xf32>
    %322 = arith.mulf %317, %321 : vector<16x128xf32>
    %323 = vector.broadcast %183 : vector<1x128xf32> to vector<16x128xf32>
    %324 = arith.mulf %322, %323 : vector<16x128xf32>
    %325 = vector.broadcast %184 : vector<1x128xf32> to vector<16x128xf32>
    %326 = arith.addf %324, %325 : vector<16x128xf32>
    %327 = arith.truncf %326 : vector<16x128xf32> to vector<16x128xbf16>
    %328 = arith.index_cast %c1_i32 : i32 to index
    %c0_78 = arith.constant 0 : index
    %c0_79 = arith.constant 0 : index
    %329 = vector.load %arg5[%328, %c0_78, %c0_79] : memref<2x128x128xbf16, #tpu.memory_space<vmem>>, vector<1x128x128xbf16>
    %330 = vector.shape_cast %329 : vector<1x128x128xbf16> to vector<128x128xbf16>
    %cst_80 = arith.constant dense<0.000000e+00> : vector<16x128xf32>
    %331 = tpu.matmul %327, %330, %cst_80 {dimension_numbers = #tpu.dot_dimension_numbers<[1], [0], [0], [1], [0, 0, 1, 1], [], []>} : vector<16x128xbf16>, vector<128x128xbf16>, vector<16x128xf32> -> vector<16x128xf32>
    %332 = vector.broadcast %185 : vector<1x128xf32> to vector<16x128xf32>
    %333 = arith.addf %331, %332 : vector<16x128xf32>
    %cst_81 = arith.constant 1.702000e+00 : f32
    %334 = vector.broadcast %cst_81 : f32 to vector<16x128xf32>
    %335 = arith.mulf %334, %333 : vector<16x128xf32>
    %336 = arith.negf %335 : vector<16x128xf32>
    %337 = math.exp %336 : vector<16x128xf32>
    %cst_82 = arith.constant 1.000000e+00 : f32
    %338 = vector.broadcast %cst_82 : f32 to vector<16x128xf32>
    %339 = arith.addf %338, %337 : vector<16x128xf32>
    %340 = arith.divf %338, %339 : vector<16x128xf32>
    %341 = arith.mulf %333, %340 : vector<16x128xf32>
    %342 = arith.truncf %341 : vector<16x128xf32> to vector<16x128xbf16>
    %343 = arith.index_cast %c1_i32 : i32 to index
    %c0_83 = arith.constant 0 : index
    %c0_84 = arith.constant 0 : index
    %344 = vector.load %arg6[%343, %c0_83, %c0_84] : memref<2x128x128xbf16, #tpu.memory_space<vmem>>, vector<1x128x128xbf16>
    %345 = vector.shape_cast %344 : vector<1x128x128xbf16> to vector<128x128xbf16>
    %cst_85 = arith.constant dense<0.000000e+00> : vector<16x128xf32>
    %346 = tpu.matmul %342, %345, %cst_85 {dimension_numbers = #tpu.dot_dimension_numbers<[1], [0], [0], [1], [0, 0, 1, 1], [], []>} : vector<16x128xbf16>, vector<128x128xbf16>, vector<16x128xf32> -> vector<16x128xf32>
    %347 = vector.broadcast %186 : vector<1x128xf32> to vector<16x128xf32>
    %348 = arith.addf %346, %347 : vector<16x128xf32>
    %349 = arith.addf %304, %348 : vector<16x128xf32>
    %c2_i32 = arith.constant 2 : i32
    %c0_86 = arith.constant 0 : index
    %c0_87 = arith.constant 0 : index
    %350 = vector.load %arg2[%c0_86, %c0_87] : memref<2x16xf32, #tpu.memory_space<vmem>>, vector<2x16xf32>
    %cst_88 = arith.constant dense<0.000000e+00> : vector<2x128xf32>
    %351 = tpu.matmul %350, %349, %cst_88 {dimension_numbers = #tpu.dot_dimension_numbers<[1], [0], [0], [1], [0, 0, 1, 1], [], []>} : vector<2x16xf32>, vector<16x128xf32>, vector<2x128xf32> -> vector<2x128xf32>
    %c0_89 = arith.constant 0 : index
    %c0_90 = arith.constant 0 : index
    %352 = vector.load %arg8[%c0_89, %c0_90] : memref<2x128xf32, #tpu.memory_space<vmem>>, vector<1x128xf32>
    %c1 = arith.constant 1 : index
    %c0_91 = arith.constant 0 : index
    %353 = vector.load %arg8[%c1, %c0_91] : memref<2x128xf32, #tpu.memory_space<vmem>>, vector<1x128xf32>
    %cst_92 = arith.constant dense<0.000000e+00> : vector<2xf32>
    %354 = vector.multi_reduction <add>, %351, %cst_92 [1] : vector<2x128xf32> to vector<2xf32>
    %355 = vector.shape_cast %354 : vector<2xf32> to vector<2x1xf32>
    %cst_93 = arith.constant 3.125000e-02 : f32
    %356 = vector.broadcast %cst_93 : f32 to vector<2x1xf32>
    %357 = arith.mulf %355, %356 : vector<2x1xf32>
    %358 = arith.mulf %351, %351 : vector<2x128xf32>
    %cst_94 = arith.constant dense<0.000000e+00> : vector<2xf32>
    %359 = vector.multi_reduction <add>, %358, %cst_94 [1] : vector<2x128xf32> to vector<2xf32>
    %360 = vector.shape_cast %359 : vector<2xf32> to vector<2x1xf32>
    %cst_95 = arith.constant 3.125000e-02 : f32
    %361 = vector.broadcast %cst_95 : f32 to vector<2x1xf32>
    %362 = arith.mulf %360, %361 : vector<2x1xf32>
    %363 = arith.mulf %357, %357 : vector<2x1xf32>
    %364 = arith.subf %362, %363 : vector<2x1xf32>
    %365 = vector.broadcast %357 : vector<2x1xf32> to vector<2x128xf32>
    %366 = arith.subf %351, %365 : vector<2x128xf32>
    %cst_96 = arith.constant 9.99999974E-6 : f32
    %367 = vector.broadcast %cst_96 : f32 to vector<2x1xf32>
    %368 = arith.addf %364, %367 : vector<2x1xf32>
    %369 = math.rsqrt %368 : vector<2x1xf32>
    %370 = vector.broadcast %369 : vector<2x1xf32> to vector<2x128xf32>
    %371 = arith.mulf %366, %370 : vector<2x128xf32>
    %372 = vector.broadcast %352 : vector<1x128xf32> to vector<2x128xf32>
    %373 = arith.mulf %371, %372 : vector<2x128xf32>
    %374 = vector.broadcast %353 : vector<1x128xf32> to vector<2x128xf32>
    %375 = arith.addf %373, %374 : vector<2x128xf32>
    %376 = arith.truncf %375 : vector<2x128xf32> to vector<2x128xbf16>
    %c0_97 = arith.constant 0 : index
    %c0_98 = arith.constant 0 : index
    %377 = vector.load %arg9[%c0_97, %c0_98] : memref<128x128xbf16, #tpu.memory_space<vmem>>, vector<128x128xbf16>
    %cst_99 = arith.constant dense<0.000000e+00> : vector<2x128xf32>
    %378 = tpu.matmul %376, %377, %cst_99 {dimension_numbers = #tpu.dot_dimension_numbers<[1], [0], [0], [1], [0, 0, 1, 1], [], []>} : vector<2x128xbf16>, vector<128x128xbf16>, vector<2x128xf32> -> vector<2x128xf32>
    %c0_100 = arith.constant 0 : index
    %c0_101 = arith.constant 0 : index
    %379 = vector.load %arg10[%c0_100, %c0_101] : memref<2x128xf32, #tpu.memory_space<vmem>>, vector<2x128xf32>
    tpu.vector_store %arg10[%c0_100, %c0_101], %378 {strides = array<i32>} : memref<2x128xf32, #tpu.memory_space<vmem>>, vector<2x128xf32>,
    return
  }
}

</mosaic_0001>

<bundles_post_ra>
// kernel: text_clip_forward.1
= control target key start
LH: loop header
LB: loop body
LE: loop exit
PB: predicated region body
PF: predicated region fallthrough
CT: control target
= control target key end

     0   :  { %15 = vsyncpa [#allocation3], 0  ;;  %s4375_s0 = inlined_call_operand.vmem [shape: f32[16,128], index: 0, kind: input, shape index: {}]   ;;  %s4376_s1 = inlined_call_operand.vmem [shape: f32[16,16], index: 1, kind: input, shape index: {}]   ;;  %s4377_s2 = inlined_call_operand.vmem [shape: f32[2,16], index: 2, kind: input, shape index: {}]   ;;  %s4378_s3 = inlined_call_operand.hbm [shape: bf16[2,128,384], index: 3, kind: input, shape index: {}]   ;;  %s4379_s4 = inlined_call_operand.vmem [shape: bf16[2,128,128], index: 4, kind: input, shape index: {}]   ;;  %s4380_s5 = inlined_call_operand.vmem [shape: bf16[2,128,128], index: 5, kind: input, shape index: {}]   ;;  %s4381_s6 = inlined_call_operand.hbm [shape: bf16[2,128,128], index: 6, kind: input, shape index: {}]   ;;  %s4382_s7 = inlined_call_operand.hbm [shape: f32[2,8,384], index: 7, kind: input, shape index: {}]   ;;  %s4383_s8 = inlined_call_operand.hbm [shape: f32[2,128], index: 8, kind: input, shape index: {}]   ;;  %s4384_s9 = inlined_call_operand.hbm [shape: bf16[128,128], index: 9, kind: input, shape index: {}]   ;;  %s4385_s10 = inlined_call_operand.hbm [shape: f32[2,128], index: 10, kind: output, shape index: {}]  }
   0x1   :  { %16 = vsyncpa [#allocation6], 0 }
   0x2   :  { %17 = vsyncpa [#allocation9], 0 }
   0x3   :  { %18 = vsyncpa [#allocation4], 0  ;;  %s3710_s13 = smov [#allocation5]   ;;  %s3570_s17 = scalar_lea.hbm %s4381_s6, 2048 }
   0x4   :  { %s46_s14 = sshll.u32 %s3710_s13, 4  ;;  %p3571_p0 = scmp.ne.s32.totalorder %s4381_s6, %s3570_s17  ;;  %s47_s14 = int_to_ptr.vmem [resolvable:$true] %s46_s14 }
   0x5   :  { %p3574_p1 = scmp.lt.u32.totalorder %s3570_s17, %s4381_s6 }
   0x7   :  { %p3576_p2 = pnand %p3574_p1, %p3571_p0 }
   0x9   :  { %3579 = shalt.err (!%p3576_p2)
}
   0xa   :  { %s3580_s22 = scalar_lea.vmem %s47_s14, 2048  ;;  %p3585_p4 = scmp.lt.s32.totalorder %s47_s14, %s47_s14 }
   0xb   :  { %p3581_p3 = scmp.ne.s32.totalorder %s47_s14, %s3580_s22  ;;  %p3586_p5 = scmp.lt.s32.totalorder %s3580_s22, %s3580_s22 }
   0xd   :  { %p3587_p6 = por %p3586_p5, %p3585_p4 }
   0xf   :  { %p3588_p7 = pnand %p3587_p6, %p3581_p3 }
  0x11   :  { %3591 = shalt.err (!%p3588_p7)
}
  0x12   :  { %s3711_s23 = smov 64   ;;  %s3712_s24 = smov 4  }
  0x13   :  { %52 = dma.hbm_to_vmem [thread:$0]  %s4381_s6, 2048, %s47_s14, [#allocation6], %s3711_s23, %s3711_s23, %s3712_s24  }
  0x14   :  { %s3713_s27 = smov [#allocation8]   ;;  %s3714_s29 = smov [#allocation2]  }
  0x15   :  { %s71_s28 = sshll.u32 %s3713_s27, 4  ;;  %s30_s30 = sshll.u32 %s3714_s29, 4  ;;  %s72_s28 = int_to_ptr.vmem [resolvable:$true] %s71_s28  ;;  %s31_s30 = int_to_ptr.vmem [resolvable:$true] %s30_s30 }
  0x16   :  { %s3592_s13 = scalar_lea.hbm %s4383_s8, 32 }
  0x17   :  { %p3593_p8 = scmp.ne.s32.totalorder %s4383_s8, %s3592_s13  ;;  %p3596_p9 = scmp.lt.u32.totalorder %s3592_s13, %s4383_s8 }
  0x19   :  { %p3598_p10 = pnand %p3596_p9, %p3593_p8 }
  0x1b   :  { %3601 = shalt.err (!%p3598_p10)
}
  0x1c   :  { %s3602_s6 = scalar_lea.vmem %s72_s28, 32  ;;  %p3607_p12 = scmp.lt.s32.totalorder %s72_s28, %s72_s28 }
  0x1d   :  { %p3603_p11 = scmp.ne.s32.totalorder %s72_s28, %s3602_s6  ;;  %p3608_p13 = scmp.lt.s32.totalorder %s3602_s6, %s3602_s6 }
  0x1f   :  { %p3609_p0 = por %p3608_p13, %p3607_p12 }
  0x21   :  { %p3610_p1 = pnand %p3609_p0, %p3603_p11 }
  0x23   :  { %3613 = shalt.err (!%p3610_p1)
}
  0x24   :  { %74 = dma.hbm_to_vmem [thread:$0]  %s4383_s8, 32, %s72_s28, [#allocation9]  }
  0x25   :  { %s3614_s22 = scalar_lea.hbm %s4378_s3, 6144 }
  0x26   :  { %p3615_p2 = scmp.ne.s32.totalorder %s4378_s3, %s3614_s22  ;;  %p3618_p3 = scmp.lt.u32.totalorder %s3614_s22, %s4378_s3 }
  0x28   :  { %p3620_p4 = pnand %p3618_p3, %p3615_p2 }
  0x2a   :  { %3623 = shalt.err (!%p3620_p4)
}
  0x2b   :  { %s3624_s11 = scalar_lea.vmem %s31_s30, 6144  ;;  %p3629_p6 = scmp.lt.s32.totalorder %s31_s30, %s31_s30 }
  0x2c   :  { %p3625_p5 = scmp.ne.s32.totalorder %s31_s30, %s3624_s11  ;;  %p3630_p7 = scmp.lt.s32.totalorder %s3624_s11, %s3624_s11 }
  0x2e   :  { %p3631_p8 = por %p3630_p7, %p3629_p6 }
  0x30   :  { %p3632_p9 = pnand %p3631_p8, %p3625_p5 }
  0x32   :  { %3635 = shalt.err (!%p3632_p9)
}
  0x33   :  { %s3715_s8 = smov 192   ;;  %s3716_s28 = smov 12  }
  0x34   :  { %36 = dma.hbm_to_vmem [thread:$0]  %s4378_s3, 6144, %s31_s30, [#allocation3], %s3715_s8, %s3715_s8, %s3716_s28  }
  0x35   :  { %s3717_s15 = smov [#allocation7]   ;;  %s3636_s6 = scalar_lea.hbm %s4382_s7, 768 }
  0x36   :  { %s58_s16 = sshll.u32 %s3717_s15, 4  ;;  %p3637_p10 = scmp.ne.s32.totalorder %s4382_s7, %s3636_s6  ;;  %s59_s16 = int_to_ptr.vmem [resolvable:$true] %s58_s16 }
  0x37   :  { %p3640_p11 = scmp.lt.u32.totalorder %s3636_s6, %s4382_s7 }
  0x39   :  { %p3642_p12 = pnand %p3640_p11, %p3637_p10 }
  0x3b   :  { %3645 = shalt.err (!%p3642_p12)
}
  0x3c   :  { %s3646_s22 = scalar_lea.vmem %s59_s16, 768  ;;  %p3651_p0 = scmp.lt.s32.totalorder %s59_s16, %s59_s16 }
  0x3d   :  { %p3647_p13 = scmp.ne.s32.totalorder %s59_s16, %s3646_s22  ;;  %p3652_p1 = scmp.lt.s32.totalorder %s3646_s22, %s3646_s22 }
  0x3f   :  { %p3653_p2 = por %p3652_p1, %p3651_p0 }
  0x41   :  { %p3654_p3 = pnand %p3653_p2, %p3647_p13 }
  0x43   :  { %3657 = shalt.err (!%p3654_p3)
}
  0x44   :  { %s3718_s3 = smov 384   ;;  %s3719_s30 = smov 24  }
  0x45   :  { %64 = dma.hbm_to_vmem [thread:$0]  %s4382_s7, 768, %s59_s16, [#allocation6], %s3718_s3, %s3718_s3, %s3719_s30  }
  0x46   :  { %s3720_s27 = smov [#allocation10]   ;;  %s3658_s28 = scalar_lea.hbm %s4384_s9, 1024 }
  0x47   :  { %s80_s29 = sshll.u32 %s3720_s27, 4  ;;  %p3659_p4 = scmp.ne.s32.totalorder %s4384_s9, %s3658_s28  ;;  %s81_s29 = int_to_ptr.vmem [resolvable:$true] %s80_s29 }
  0x48   :  { %p3662_p5 = scmp.lt.u32.totalorder %s3658_s28, %s4384_s9 }
  0x4a   :  { %p3664_p6 = pnand %p3662_p5, %p3659_p4 }
  0x4c   :  { %3667 = shalt.err (!%p3664_p6)
}
  0x4d   :  { %s3668_s18 = scalar_lea.vmem %s81_s29, 1024  ;;  %p3673_p8 = scmp.lt.s32.totalorder %s81_s29, %s81_s29 }
  0x4e   :  { %p3669_p7 = scmp.ne.s32.totalorder %s81_s29, %s3668_s18  ;;  %p3674_p9 = scmp.lt.s32.totalorder %s3668_s18, %s3668_s18 }
  0x50   :  { %p3675_p10 = por %p3674_p9, %p3673_p8 }
  0x52   :  { %p3676_p11 = pnand %p3675_p10, %p3669_p7 }
  0x54   :  { %3679 = shalt.err (!%p3676_p11)
}
  0x55   :  { %86 = dma.hbm_to_vmem [thread:$0]  %s4384_s9, 1024, %s81_s29, [#allocation9], %s3711_s23, %s3711_s23, %s3712_s24  }
  0x56   :  { %3702 = dma.done.wait [#allocation3], 6144  }
  0x57   :  { %3703 = vsyncadd [#allocation3], 4294961152 }
  0x58   :  { %3704 = dma.done.wait [#allocation6], 2816  }
  0x59   :  { %3705 = vsyncadd [#allocation6], 4294964480 }
  0x5a   :  { %3706 = dma.done.wait [#allocation9], 1056  }
  0x5b   :  { %3707 = vsyncadd [#allocation9], 4294966240  ;;  %v3721_v0 = vmov 0.0   ;;  %v3853_v1 = vld [vmem:[%s4375_s0] sm:$0xff]  ;;  %v3858_v2 = vld [vmem:[%s4375_s0 + $0x8] sm:$0xff]  ;;  %v3722_v26 = vmov 0   ;;  %v136_v42 = vlaneseq }
  0x5c   :  { %3014 = vmatprep.subr.bf16.mxu1 %v3721_v0  ;;  %110 = vadd.xlane.f32.xlu0 %v3853_v1  ;;  %v116_v3 = vmul.f32 %v3853_v1, %v3853_v1  ;;  %v3348_v4 = vld [vmem:[#allocation2 + $0x4] ss:$12 sps:$4 sm:$0xff]   ;;  %v117_v5 = vmul.f32 %v3858_v2, %v3858_v2  ;;  %v3350_v6 = vld [vmem:[#allocation2] ss:$12 sps:$4 sm:$0xff]   ;;  %v3351_v7 = vld [vmem:[#allocation2 + $0x8] ss:$12 sps:$4 sm:$0xff]  }
  0x5d   :  { %321 = vmatprep.subr.bf16.mxu0 %v3348_v4  ;;  %3015 = vmatpush3.bf16.msra.mxu1 %v3351_v7  ;;  %v3352_v8 = vld [vmem:[#allocation2 + $0x1c] ss:$12 sps:$4 sm:$0xff]   ;;  %v3354_v9 = vld [vmem:[#allocation2 + $0x18] ss:$12 sps:$4 sm:$0xff]   ;;  %v3355_v10 = vld [vmem:[#allocation2 + $0x20] ss:$12 sps:$4 sm:$0xff]  }
  0x5e   :  { %118 = vadd.xlane.f32.xlu1 %v116_v3  ;;  %322 = vmatpush1.bf16.msra.mxu0 %v3350_v6  ;;  %v3356_v11 = vld [vmem:[#allocation2 + $0x34] ss:$12 sps:$4 sm:$0xff]   ;;  %v3358_v12 = vld [vmem:[#allocation2 + $0x30] ss:$12 sps:$4 sm:$0xff]   ;;  %v3359_v13 = vld [vmem:[#allocation2 + $0x38] ss:$12 sps:$4 sm:$0xff]  }
  0x5f   :  { %3016 = vmatprep.subr.bf16.mxu1 %v3721_v0  ;;  %323 = vmatprep.subr.bf16.mxu0 %v3352_v8  ;;  %v3360_v14 = vld [vmem:[#allocation2 + $0x4c] ss:$12 sps:$4 sm:$0xff]   ;;  %v3362_v15 = vld [vmem:[#allocation2 + $0x48] ss:$12 sps:$4 sm:$0xff]   ;;  %v3363_v16 = vld [vmem:[#allocation2 + $0x50] ss:$12 sps:$4 sm:$0xff]  }
  0x60   :  { %112 = vadd.xlane.f32.xlu0 %v3858_v2  ;;  %v3364_v17 = vld [vmem:[#allocation2 + $0x64] ss:$12 sps:$4 sm:$0xff]   ;;  %v3366_v18 = vld [vmem:[#allocation2 + $0x60] ss:$12 sps:$4 sm:$0xff]   ;;  %v3367_v19 = vld [vmem:[#allocation2 + $0x68] ss:$12 sps:$4 sm:$0xff]   ;;  %353 = vmatprep.mubr.bf16.mxu0 %v3722_v26 }
  0x61   :  { %3017 = vmatpush3.bf16.msra.mxu1 %v3355_v10  ;;  %v3368_v20 = vld [vmem:[#allocation2 + $0x7c] ss:$12 sps:$4 sm:$0xff]   ;;  %v3370_v21 = vld [vmem:[#allocation2 + $0x78] ss:$12 sps:$4 sm:$0xff]   ;;  %v3371_v22 = vld [vmem:[#allocation2 + $0x80] ss:$12 sps:$4 sm:$0xff]  }
  0x62   :  { %120 = vadd.xlane.f32.xlu1 %v117_v5  ;;  %324 = vmatpush1.bf16.msra.mxu0 %v3354_v9  ;;  %v3372_v23 = vld [vmem:[#allocation2 + $0x94] ss:$12 sps:$4 sm:$0xff]   ;;  %v3374_v24 = vld [vmem:[#allocation2 + $0x90] ss:$12 sps:$4 sm:$0xff]   ;;  %v3375_v25 = vld [vmem:[#allocation2 + $0x98] ss:$12 sps:$4 sm:$0xff]  }
  0x63   :  { %3018 = vmatprep.subr.bf16.mxu1 %v3721_v0  ;;  %325 = vmatprep.subr.bf16.mxu0 %v3356_v11  ;;  %vm3723_vm0 = vmmov 0   ;;  %v3376_v27 = vld [vmem:[#allocation2 + $0xac] ss:$12 sps:$4 sm:$0xff]   ;;  %v3378_v28 = vld [vmem:[#allocation2 + $0xa8] ss:$12 sps:$4 sm:$0xff]   ;;  %v3878_v45 = vshrl.u32 %v136_v42, 7 }
  0x64   :  { %3030 = vmatprep.mubr.msk.bf16.mxu1 %vm3723_vm0, %v3721_v0  ;;  %v3379_v29 = vld [vmem:[#allocation2 + $0xb0] ss:$12 sps:$4 sm:$0xff]   ;;  %v3881_v47 = vld [vmem:[#allocation7] sm:$0xff]  ;;  %vm408_vm1 = vcmask 261120   ;;  %s3724_s9 = smov 96   ;;  %s3725_s24 = smov 32  }
  0x65   :  { %3019 = vmatpush3.bf16.msra.mxu1 %v3359_v13  ;;  %v138_v46 = vsub.s32 2, %v3878_v45  ;;  %v144_v52 = vsub.s32 3, %v3878_v45  ;;  %v3897_v62 = vsub.s32 0, %v3878_v45  ;;  %v109_v63 = vld [vmem:[#allocation7 + $0x10] sm:$0xff]  ;;  %vm456_vm2 = vcmask 130048  }
  0x66   :  { %326 = vmatpush1.bf16.msra.mxu0 %v3358_v12  ;;  %3020 = vmatprep.subr.bf16.mxu1 %v3721_v0  ;;  %vm916_vm3 = vcmask 523264   ;;  %vm919_vm4 = vcmask 785408   ;;  %vm2590_vm5 = vcmask 1041408  }
  0x67   :  { %327 = vmatprep.subr.bf16.mxu0 %v3360_v14  ;;  %v139_v51 = vrot.slane %v3881_v47, %v138_v46  ;;  %v145_v57 = vrot.slane %v3881_v47, %v144_v52  ;;  %v192_v3 = vrot.slane %v109_v63, %v3897_v62 }
  0x69   :  { %3021 = vmatpush3.bf16.msra.mxu1 %v3363_v16 }
  0x6a   :  { %328 = vmatpush1.bf16.msra.mxu0 %v3362_v15  ;;  %3022 = vmatprep.subr.bf16.mxu1 %v3721_v0 }
  0x6b   :  { %329 = vmatprep.subr.bf16.mxu0 %v3364_v17 }
  0x6d   :  { %3023 = vmatpush3.bf16.msra.mxu1 %v3367_v19 }
  0x6e   :  { %330 = vmatpush1.bf16.msra.mxu0 %v3366_v18  ;;  %3024 = vmatprep.subr.bf16.mxu1 %v3721_v0 }
  0x6f   :  { %331 = vmatprep.subr.bf16.mxu0 %v3368_v20 }
  0x71   :  { %3025 = vmatpush3.bf16.msra.mxu1 %v3371_v22 }
  0x72   :  { %332 = vmatpush1.bf16.msra.mxu0 %v3370_v21  ;;  %3026 = vmatprep.subr.bf16.mxu1 %v3721_v0 }
  0x73   :  { %333 = vmatprep.subr.bf16.mxu0 %v3372_v23 }
  0x75   :  { %3027 = vmatpush3.bf16.msra.mxu1 %v3375_v25 }
  0x76   :  { %334 = vmatpush1.bf16.msra.mxu0 %v3374_v24  ;;  %3028 = vmatprep.subr.bf16.mxu1 %v3721_v0 }
  0x77   :  { %335 = vmatprep.subr.bf16.mxu0 %v3376_v27 }
  0x79   :  { %3029 = vmatpush3.bf16.msra.mxu1 %v3379_v29 }
  0x7a   :  { %336 = vmatpush1.bf16.msra.mxu0 %v3378_v28  ;;  %3040 = vmatprep.subr.bf16.mxu1 %v3721_v0 }
  0x7b   :  { %3034 = vmatprep.subr.bf16.mxu0 %v3721_v0 }
  0xe9   :  { %v111_v30 = vpop.xlane.xlu0 %110 }
  0xea   :  { %v114_v31 = vmul.f32 0.03125, %v111_v30 }
  0xeb   :  { %v119_v32 = vpop.xlane.xlu1 %118 }
  0xec   :  { %v124_v33 = vmul.f32 %v114_v31, %v114_v31  ;;  %v122_v34 = vmul.f32 0.03125, %v119_v32  ;;  %v128_v48 = vsub.f32 %v3853_v1, %v114_v31  ;;  %v108_v1 = vld [vmem:[#allocation7 + $0x8] sm:$0xff] }
  0xed   :  { %v113_v35 = vpop.xlane.xlu0 %112  ;;  %v188_v6 = vrot.slane %v108_v1, %v3897_v62 }
  0xee   :  { %v126_v36 = vsub.f32 %v122_v34, %v124_v33  ;;  %v115_v37 = vmul.f32 0.03125, %v113_v35  ;;  %v3936_v33 = vld [vmem:[%s4376_s1] sm:$0xff]  ;;  %v3941_v35 = vld [vmem:[%s4376_s1 + $0x8] sm:$0xff] }
  0xef   :  { %v121_v38 = vpop.xlane.xlu1 %120 }
  0xf0   :  { %v130_v39 = vadd.f32 1e-05, %v126_v36  ;;  %v125_v40 = vmul.f32 %v115_v37, %v115_v37  ;;  %v123_v41 = vmul.f32 0.03125, %v121_v38  ;;  %v129_v53 = vsub.f32 %v3858_v2, %v115_v37 }
  0xf1   :  { %v184_v2 = vrot.slane %v3881_v47, %v3897_v62 }
  0xf2   :  { %3468 = vrsqrt.f32 %v130_v39  ;;  %v127_v43 = vsub.f32 %v123_v41, %v125_v40 }
  0xf4   :  { %v131_v44 = vadd.f32 1e-05, %v127_v43 }
  0xf6   :  { %3470 = vrsqrt.f32 %v131_v44 }
  0xfc   :  { %v3469_v49 = vpop.eup %3468 }
  0xfd   :  { %v134_v50 = vmul.f32 %v3469_v49, %v128_v48 }
  0xff   :  { %v140_v56 = vmul.f32 %v139_v51, %v134_v50 }
 0x100   :  { %v3471_v54 = vpop.eup %3470 }
 0x101   :  { %v135_v55 = vmul.f32 %v3471_v54, %v129_v53  ;;  %v146_v59 = vadd.f32 %v145_v57, %v140_v56 }
 0x103   :  { %v141_v58 = vmul.f32 %v139_v51, %v135_v55 }
 0x105   :  { %v147_v60 = vadd.f32 %v145_v57, %v141_v58 }
 0x107   :  { %v148_v61 = vpack.c.bf16 %v147_v60, %v146_v59 }
 0x109   :  { %354 = vmatmul.mubr.bf16.vlgmr.msra.gmra.mrb[0].mxu0 %v148_v61  ;;  %3031 = vmatmul.mubr.bf16.vlgmr.msra.gmra.mrb[0].mxu1 %v148_v61 }
 0x10a   :  { %3036 = vmatprep.mubr.msk.bf16.mxu0 %vm3723_vm0, %v3721_v0  ;;  %3042 = vmatprep.mubr.msk.bf16.mxu1 %vm3723_vm0, %v3721_v0 }
 0x1dc   :  { %v355_v4 = vpop.f32.mrb[0].mxu0  ;;  %v398_v5 = vpop.f32.mrb[0].mxu1 }
 0x1dd   :  { %v357_v7 = vpop.f32.mrb[1].mxu0  ;;  %v3032_v8 = vpop.f32.mrb[1].mxu1  ;;  %v356_v11 = vadd.f32 %v355_v4, %v184_v2  ;;  %v399_v12 = vadd.f32 %v398_v5, %v192_v3 }
 0x1de   :  { %v359_v9 = vpop.f32.mrb[2].mxu0  ;;  %v401_v10 = vpop.f32.mrb[2].mxu1  ;;  %v358_v17 = vadd.f32 %v357_v7, %v188_v6 }
 0x1df   :  { %v360_v13 = vadd.f32 %v359_v9, %v184_v2  ;;  %v402_v14 = vadd.f32 %v401_v10, %v192_v3  ;;  %v361_v15 = vpop.f32.mrb[3].mxu0  ;;  %v3033_v16 = vpop.f32.mrb[3].mxu1 }
 0x1e0   :  { %v362_v18 = vadd.f32 %v361_v15, %v188_v6 }
 0x1e1   :  { %v405_v19 = vpack.c.bf16 %v360_v13, %v356_v11  ;;  %v3903_v20 = vpack.c.bf16 %v402_v14, %v399_v12 }
 0x1e2   :  { %v406_v21 = vpack.c.bf16 %v362_v18, %v358_v17 }
 0x1e3   :  { %3041 = vmatpush3.bf16.msra.mxu1 %v3903_v20  ;;  %525 = vrot.lane.b32.xlu1 %v405_v19, %s3724_s9 }
 0x1e4   :  { %528 = vrot.lane.b32.xlu0 %v406_v21, %s3724_s9  ;;  %v413_v22 = vsel %vm408_vm1, %v406_v21, 0  ;;  %3052 = vmatprep.subr.bf16.mxu1 %v3721_v0 }
 0x1e5   :  { %3035 = vmatpush3.bf16.xpose.msra.mxu0 %v413_v22 }
 0x1e6   :  { %3046 = vmatprep.subr.bf16.mxu0 %v3721_v0 }
 0x1e7   :  { %650 = vrot.lane.b32.xlu1 %v406_v21, %s3711_s23 }
 0x1e8   :  { %771 = vrot.lane.b32.xlu0 %v406_v21, %s3725_s24 }
 0x1eb   :  { %648 = vrot.lane.b32.xlu1 %v405_v19, %s3711_s23 }
 0x1ec   :  { %3037 = vmatmul.mubr.msk.bf16.vlgmr.msra.gmra.mrb[4].mxu0 %vm408_vm1, %v405_v19 }
 0x1ed   :  { %3048 = vmatprep.mubr.msk.bf16.mxu0 %vm3723_vm0, %v3721_v0 }
 0x1ef   :  { %769 = vrot.lane.b32.xlu1 %v405_v19, %s3725_s24 }
 0x255   :  { %v526_v23 = vpop.permute.xlu1 %525 }
 0x256   :  { %v529_v24 = vpop.permute.xlu0 %528 }
 0x257   :  { %v534_v25 = vsel %vm408_vm1, %v529_v24, 0 }
 0x258   :  { %3047 = vmatpush3.bf16.xpose.msra.mxu0 %v534_v25 }
 0x259   :  { %3058 = vmatprep.subr.bf16.mxu0 %v3721_v0  ;;  %v651_v27 = vpop.permute.xlu1 %650 }
 0x25a   :  { %v656_v28 = vsel %vm408_vm1, %v651_v27, 0  ;;  %v772_v29 = vpop.permute.xlu0 %771 }
 0x25b   :  { %v777_v31 = vsel %vm408_vm1, %v772_v29, 0 }
 0x25d   :  { %v649_v30 = vpop.permute.xlu1 %648 }
 0x25f   :  { %3049 = vmatmul.mubr.msk.bf16.vlgmr.msra.gmra.mrb[8].mxu0 %vm408_vm1, %v526_v23 }
 0x260   :  { %3059 = vmatpush3.bf16.xpose.msra.mxu0 %v656_v28  ;;  %3060 = vmatprep.mubr.msk.bf16.mxu0 %vm3723_vm0, %v3721_v0 }
 0x261   :  { %3070 = vmatprep.subr.bf16.mxu0 %v3721_v0  ;;  %v770_v32 = vpop.permute.xlu1 %769 }
 0x267   :  { %3061 = vmatmul.mubr.msk.bf16.vlgmr.msra.gmra.mrb[12].mxu0 %vm408_vm1, %v649_v30 }
 0x268   :  { %3071 = vmatpush3.bf16.xpose.msra.mxu0 %v777_v31  ;;  %3072 = vmatprep.mubr.msk.bf16.mxu0 %vm3723_vm0, %v3721_v0 }
 0x269   :  { %3082 = vmatprep.subr.bf16.mxu0 %v3721_v0 }
 0x26f   :  { %3073 = vmatmul.mubr.msk.bf16.vlgmr.msra.gmra.mrb[16].mxu0 %vm408_vm1, %v770_v32 }
 0x270   :  { %3098 = vmatprep.mubr.msk.bf16.mxu0 %vm3723_vm0, %v3721_v0 }
 0x2bf   :  { %v449_v34 = vpop.f32.mrb[4].mxu0 }
 0x2c0   :  { %v450_v36 = vadd.f32 %v449_v34, %v3936_v33  ;;  %v3038_v37 = vpop.f32.mrb[5].mxu0 }
 0x2c1   :  { %v452_v38 = vpop.f32.mrb[6].mxu0 }
 0x2c2   :  { %v453_v39 = vadd.f32 %v452_v38, %v3941_v35  ;;  %v3039_v40 = vpop.f32.mrb[7].mxu0  ;;  %v457_v41 = vsel %vm456_vm2, %v450_v36, -inf }
 0x2c3   :  { %458 = vmax.xlane.f32.xlu0 %v457_v41 }
 0x2c4   :  { %v460_v42 = vsel %vm456_vm2, %v453_v39, -inf }
 0x2c5   :  { %461 = vmax.xlane.f32.xlu1 %v460_v42 }
 0x332   :  { %v570_v43 = vpop.f32.mrb[8].mxu0 }
 0x333   :  { %v571_v44 = vadd.f32 %v570_v43, %v3936_v33  ;;  %v3050_v48 = vpop.f32.mrb[9].mxu0 }
 0x334   :  { %v573_v49 = vpop.f32.mrb[10].mxu0 }
 0x335   :  { %v574_v50 = vadd.f32 %v573_v49, %v3941_v35  ;;  %v3051_v51 = vpop.f32.mrb[11].mxu0  ;;  %v577_v53 = vsel %vm456_vm2, %v571_v44, -inf }
 0x336   :  { %578 = vmax.xlane.f32.xlu0 %v577_v53 }
 0x337   :  { %v580_v54 = vsel %vm456_vm2, %v574_v50, -inf }
 0x33a   :  { %581 = vmax.xlane.f32.xlu0 %v580_v54  ;;  %v692_v55 = vpop.f32.mrb[12].mxu0 }
 0x33b   :  { %v693_v56 = vadd.f32 %v692_v55, %v3936_v33  ;;  %v3062_v57 = vpop.f32.mrb[13].mxu0 }
 0x33c   :  { %v695_v58 = vpop.f32.mrb[14].mxu0 }
 0x33d   :  { %v696_v59 = vadd.f32 %v695_v58, %v3941_v35  ;;  %v3063_v60 = vpop.f32.mrb[15].mxu0  ;;  %v699_v61 = vsel %vm456_vm2, %v693_v56, -inf }
 0x33e   :  { %700 = vmax.xlane.f32.xlu0 %v699_v61 }
 0x33f   :  { %v702_v63 = vsel %vm456_vm2, %v696_v59, -inf }
 0x340   :  { %703 = vmax.xlane.f32.xlu1 %v702_v63 }
 0x342   :  { %v813_v1 = vpop.f32.mrb[16].mxu0 }
 0x343   :  { %v814_v2 = vadd.f32 %v813_v1, %v3936_v33  ;;  %v3074_v3 = vpop.f32.mrb[17].mxu0 }
 0x344   :  { %v816_v4 = vpop.f32.mrb[18].mxu0 }
 0x345   :  { %v3957_v5 = vadd.f32 %v816_v4, %v3941_v35  ;;  %v3075_v6 = vpop.f32.mrb[19].mxu0  ;;  %v820_v7 = vsel %vm456_vm2, %v814_v2, -inf }
 0x346   :  { %821 = vmax.xlane.f32.xlu0 %v820_v7 }
 0x347   :  { %v823_v8 = vsel %vm456_vm2, %v3957_v5, -inf }
 0x348   :  { %824 = vmax.xlane.f32.xlu1 %v823_v8 }
 0x350   :  { %v459_v9 = vpop.xlane.xlu0 %458 }
 0x351   :  { %v463_v10 = vsub.f32 %v450_v36, %v459_v9 }
 0x352   :  { %v462_v11 = vpop.xlane.xlu1 %461 }
 0x353   :  { %v465_v12 = vmul.f32 1.442695, %v463_v10  ;;  %v464_v13 = vsub.f32 %v453_v39, %v462_v11 }
 0x355   :  { %3472 = vpow2.f32 %v465_v12  ;;  %v467_v14 = vmul.f32 1.442695, %v464_v13 }
 0x357   :  { %3474 = vpow2.f32 %v467_v14 }
 0x35f   :  { %v3473_v15 = vpop.eup %3472 }
 0x360   :  { %v469_v16 = vsel %vm456_vm2, %v3473_v15, 0.0 }
 0x361   :  { %v3475_v17 = vpop.eup %3474  ;;  %470 = vadd.xlane.f32.xlu0 %v469_v16 }
 0x362   :  { %v472_v18 = vsel %vm456_vm2, %v3475_v17, 0.0 }
 0x363   :  { %473 = vadd.xlane.f32.xlu1 %v472_v18 }
 0x3c3   :  { %v579_v19 = vpop.xlane.xlu0 %578 }
 0x3c4   :  { %v583_v21 = vsub.f32 %v571_v44, %v579_v19 }
 0x3c6   :  { %v585_v22 = vmul.f32 1.442695, %v583_v21 }
 0x3c7   :  { %v582_v23 = vpop.xlane.xlu0 %581 }
 0x3c8   :  { %3476 = vpow2.f32 %v585_v22  ;;  %v584_v24 = vsub.f32 %v574_v50, %v582_v23 }
 0x3ca   :  { %v587_v25 = vmul.f32 1.442695, %v584_v24 }
 0x3cb   :  { %v701_v27 = vpop.xlane.xlu0 %700 }
 0x3cc   :  { %3478 = vpow2.f32 %v587_v25  ;;  %v705_v28 = vsub.f32 %v693_v56, %v701_v27 }
 0x3cd   :  { %v704_v29 = vpop.xlane.xlu1 %703 }
 0x3ce   :  { %v707_v30 = vmul.f32 1.442695, %v705_v28  ;;  %v706_v31 = vsub.f32 %v696_v59, %v704_v29 }
 0x3d0   :  { %3480 = vpow2.f32 %v707_v30  ;;  %v709_v32 = vmul.f32 1.442695, %v706_v31 }
 0x3d2   :  { %v3477_v34 = vpop.eup %3476  ;;  %3482 = vpow2.f32 %v709_v32 }
 0x3d3   :  { %v822_v36 = vpop.xlane.xlu0 %821  ;;  %v589_v37 = vsel %vm456_vm2, %v3477_v34, 0.0 }
 0x3d4   :  { %v826_v38 = vsub.f32 %v814_v2, %v822_v36  ;;  %590 = vadd.xlane.f32.xlu0 %v589_v37  ;;  %v3380_v36 = vld [vmem:[%s4379_s4] sm:$0xff]  }
 0x3d5   :  { %v825_v51 = vpop.xlane.xlu1 %824  ;;  %3083 = vmatpush3.bf16.msra.mxu0 %v3380_v36  ;;  %v3393_v36 = vld [vmem:[%s4380_s5 + $0x28] sm:$0xff]  }
 0x3d6   :  { %v3479_v39 = vpop.eup %3478  ;;  %v828_v40 = vmul.f32 1.442695, %v826_v38  ;;  %v827_v59 = vsub.f32 %v3957_v5, %v825_v51  ;;  %3084 = vmatprep.subr.bf16.mxu0 %v3721_v0  ;;  %v3385_v51 = vld [vmem:[%s4379_s4 + $0x28] sm:$0xff]  }
 0x3d7   :  { %v592_v41 = vsel %vm456_vm2, %v3479_v39, 0.0 }
 0x3d8   :  { %3484 = vpow2.f32 %v828_v40  ;;  %593 = vadd.xlane.f32.xlu1 %v592_v41  ;;  %v830_v61 = vmul.f32 1.442695, %v827_v59  ;;  %v3382_v41 = vld [vmem:[%s4379_s4 + $0x10] sm:$0xff]  }
 0x3da   :  { %v3481_v42 = vpop.eup %3480 }
 0x3db   :  { %v711_v43 = vsel %vm456_vm2, %v3481_v42, 0.0 }
 0x3dc   :  { %v3483_v44 = vpop.eup %3482  ;;  %712 = vadd.xlane.f32.xlu0 %v711_v43 }
 0x3dd   :  { %v714_v48 = vsel %vm456_vm2, %v3483_v44, 0.0 }
 0x3de   :  { %715 = vadd.xlane.f32.xlu1 %v714_v48 }
 0x3e2   :  { %v3485_v49 = vpop.eup %3484 }
 0x3e3   :  { %v832_v50 = vsel %vm456_vm2, %v3485_v49, 0.0 }
 0x3e4   :  { %833 = vadd.xlane.f32.xlu0 %v832_v50  ;;  %v3384_v50 = vld [vmem:[%s4379_s4 + $0x20] sm:$0xff]  }
 0x3ee   :  { %v471_v53 = vpop.xlane.xlu0 %470 }
 0x3ef   :  { %3486 = vrcp.f32 %v471_v53  ;;  %722 = vrot.lane.b32.xlu1 %v3903_v20, %s3711_s23  ;;  %v3386_v53 = vld [vmem:[%s4379_s4 + $0x30] sm:$0xff]  }
 0x3f0   :  { %v474_v54 = vpop.xlane.xlu1 %473 }
 0x3f1   :  { %3488 = vrcp.f32 %v474_v54  ;;  %v3387_v54 = vld [vmem:[%s4379_s4 + $0x38] sm:$0xff]  }
 0x3f2   :  { %3490 = vpow2.f32 %v830_v61 }
 0x3f9   :  { %v3487_v55 = vpop.eup %3486 }
 0x3fa   :  { %601 = vrot.lane.b32.xlu0 %v3903_v20, %s3724_s9  ;;  %v477_v57 = vmul.f32 %v3487_v55, %v3473_v15 }
 0x3fb   :  { %v3489_v56 = vpop.eup %3488 }
 0x3fc   :  { %v478_v58 = vmul.f32 %v3489_v56, %v3475_v17  ;;  %v3491_v63 = vpop.eup %3490 }
 0x3fd   :  { %v835_v1 = vsel %vm456_vm2, %v3491_v63, 0.0 }
 0x3fe   :  { %v479_v60 = vpack.c.bf16 %v478_v58, %v477_v57 }
 0x400   :  { %3043 = vmatmul.mubr.msk.bf16.vlgmr.msra.gmra.mrb[4].mxu1 %vm456_vm2, %v479_v60 }
 0x401   :  { %3054 = vmatprep.mubr.msk.bf16.mxu1 %vm3723_vm0, %v3721_v0 }
 0x413   :  { %836 = vadd.xlane.f32.xlu1 %v835_v1 }
 0x424   :  { %843 = vrot.lane.b32.xlu1 %v3903_v20, %s3725_s24 }
 0x461   :  { %v591_v2 = vpop.xlane.xlu0 %590 }
 0x465   :  { %v594_v3 = vpop.xlane.xlu1 %593 }
 0x466   :  { %3492 = vrcp.f32 %v594_v3 }
 0x467   :  { %3494 = vrcp.f32 %v591_v2 }
 0x469   :  { %v713_v5 = vpop.xlane.xlu0 %712 }
 0x46b   :  { %v716_v4 = vpop.xlane.xlu1 %715 }
 0x46c   :  { %3496 = vrcp.f32 %v716_v4 }
 0x46d   :  { %3498 = vrcp.f32 %v713_v5 }
 0x46f   :  { %v723_v20 = vpop.permute.xlu1 %722 }
 0x470   :  { %v3493_v6 = vpop.eup %3492 }
 0x471   :  { %v834_v7 = vpop.xlane.xlu0 %833  ;;  %v3495_v8 = vpop.eup %3494  ;;  %v598_v9 = vmul.f32 %v3493_v6, %v3479_v39  ;;  %v3381_v39 = vld [vmem:[%s4379_s4 + $0x8] sm:$0xff]  }
 0x472   :  { %v597_v10 = vmul.f32 %v3495_v8, %v3477_v34  ;;  %3500 = vrcp.f32 %v834_v7  ;;  %3085 = vmatpush3.bf16.msra.mxu0 %v3381_v39 }
 0x473   :  { %3086 = vmatprep.subr.bf16.mxu0 %v3721_v0 }
 0x474   :  { %v599_v12 = vpack.c.bf16 %v598_v9, %v597_v10 }
 0x475   :  { %v602_v11 = vpop.permute.xlu0 %601 }
 0x476   :  { %3053 = vmatpush3.bf16.msra.mxu1 %v602_v11  ;;  %v3497_v13 = vpop.eup %3496  ;;  %3087 = vmatpush3.bf16.msra.mxu0 %v3382_v41 }
 0x477   :  { %3064 = vmatprep.subr.bf16.mxu1 %v3721_v0  ;;  %v3499_v14 = vpop.eup %3498  ;;  %v720_v15 = vmul.f32 %v3497_v13, %v3483_v44  ;;  %3088 = vmatprep.subr.bf16.mxu0 %v3721_v0 }
 0x478   :  { %v719_v16 = vmul.f32 %v3499_v14, %v3481_v42 }
 0x479   :  { %3055 = vmatmul.mubr.msk.bf16.vlgmr.msra.gmra.mrb[8].mxu1 %vm456_vm2, %v599_v12 }
 0x47a   :  { %3065 = vmatpush3.bf16.msra.mxu1 %v723_v20  ;;  %3066 = vmatprep.mubr.msk.bf16.mxu1 %vm3723_vm0, %v3721_v0  ;;  %v721_v17 = vpack.c.bf16 %v720_v15, %v719_v16  ;;  %v941_v20 = vsub.s32 1, %v3878_v45 }
 0x47b   :  { %3076 = vmatprep.subr.bf16.mxu1 %v3721_v0 }
 0x47c   :  { %v3501_v21 = vpop.eup %3500  ;;  %v942_v14 = vrot.slane %v3881_v47, %v941_v20 }
 0x47d   :  { %v840_v23 = vmul.f32 %v3501_v21, %v3485_v49  ;;  %v3383_v49 = vld [vmem:[%s4379_s4 + $0x18] sm:$0xff]  }
 0x47e   :  { %3089 = vmatpush3.bf16.msra.mxu0 %v3383_v49 }
 0x47f   :  { %3090 = vmatprep.subr.bf16.mxu0 %v3721_v0 }
 0x481   :  { %3067 = vmatmul.mubr.msk.bf16.vlgmr.msra.gmra.mrb[12].mxu1 %vm456_vm2, %v721_v17 }
 0x482   :  { %3078 = vmatprep.mubr.msk.bf16.mxu1 %vm3723_vm0, %v3721_v0  ;;  %3091 = vmatpush3.bf16.msra.mxu0 %v3384_v50 }
 0x483   :  { %3092 = vmatprep.subr.bf16.mxu0 %v3721_v0 }
 0x486   :  { %3093 = vmatpush3.bf16.msra.mxu0 %v3385_v51 }
 0x487   :  { %3094 = vmatprep.subr.bf16.mxu0 %v3721_v0 }
 0x48a   :  { %3095 = vmatpush3.bf16.msra.mxu0 %v3386_v53 }
 0x48b   :  { %3096 = vmatprep.subr.bf16.mxu0 %v3721_v0 }
 0x48e   :  { %3097 = vmatpush3.bf16.msra.mxu0 %v3387_v54 }
 0x48f   :  { %3122 = vmatprep.subr.bf16.mxu0 %v3721_v0 }
 0x4a0   :  { %v837_v18 = vpop.xlane.xlu1 %836 }
 0x4a1   :  { %3502 = vrcp.f32 %v837_v18 }
 0x4a4   :  { %v844_v19 = vpop.permute.xlu1 %843 }
 0x4a5   :  { %3077 = vmatpush3.bf16.msra.mxu1 %v844_v19  ;;  %v3566_v19 = vld [vmem:[%s4375_s0] sm:$0xff] }
 0x4a6   :  { %3102 = vmatprep.subr.bf16.mxu1 %v3721_v0 }
 0x4ab   :  { %v3503_v22 = vpop.eup %3502 }
 0x4ac   :  { %v841_v24 = vmul.f32 %v3503_v22, %v3491_v63 }
 0x4ae   :  { %v842_v25 = vpack.c.bf16 %v841_v24, %v840_v23  ;;  %v3567_v24 = vld [vmem:[%s4375_s0 + $0x8] sm:$0xff] }
 0x4b0   :  { %3079 = vmatmul.mubr.msk.bf16.vlgmr.msra.gmra.mrb[16].mxu1 %vm456_vm2, %v842_v25 }
 0x4b1   :  { %3118 = vmatprep.mubr.msk.bf16.mxu1 %vm3723_vm0, %v3721_v0 }
 0x4d3   :  { %v517_v27 = vpop.f32.mrb[4].mxu1 }
 0x4d4   :  { %v3044_v28 = vpop.f32.mrb[5].mxu1 }
 0x4d5   :  { %v520_v29 = vpop.f32.mrb[6].mxu1 }
 0x4d6   :  { %v3045_v30 = vpop.f32.mrb[7].mxu1 }
 0x4d7   :  { %v3389_v30 = vld [vmem:[%s4380_s5 + $0x8] sm:$0xff]  }
 0x54c   :  { %v641_v31 = vpop.f32.mrb[8].mxu1 }
 0x54d   :  { %v3056_v32 = vpop.f32.mrb[9].mxu1 }
 0x54e   :  { %v644_v34 = vpop.f32.mrb[10].mxu1  ;;  %v3391_v32 = vld [vmem:[%s4380_s5 + $0x18] sm:$0xff]  }
 0x54f   :  { %v3318_v37 = vpack.i.bf16 %v644_v34, %v641_v31  ;;  %v3057_v38 = vpop.f32.mrb[11].mxu1  ;;  %v3390_v31 = vld [vmem:[%s4380_s5 + $0x10] sm:$0xff]   ;;  %v3392_v34 = vld [vmem:[%s4380_s5 + $0x20] sm:$0xff]  }
 0x550   :  { %v3395_v38 = vld [vmem:[%s4380_s5 + $0x38] sm:$0xff]  }
 0x551   :  { %3319 = vrot.lane.b32.xlu1 %v3318_v37, %s3725_s24  ;;  %v3394_v37 = vld [vmem:[%s4380_s5 + $0x30] sm:$0xff]  }
 0x554   :  { %v762_v40 = vpop.f32.mrb[12].mxu1 }
 0x555   :  { %v3068_v42 = vpop.f32.mrb[13].mxu1 }
 0x556   :  { %v765_v43 = vpop.f32.mrb[14].mxu1 }
 0x557   :  { %v3323_v44 = vpack.i.bf16 %v765_v43, %v762_v40  ;;  %v3069_v48 = vpop.f32.mrb[15].mxu1 }
 0x559   :  { %3324 = vrot.lane.b32.xlu0 %v3323_v44, %s3711_s23 }
 0x583   :  { %v883_v55 = vpop.f32.mrb[16].mxu1 }
 0x584   :  { %v3080_v56 = vpop.f32.mrb[17].mxu1 }
 0x585   :  { %v886_v57 = vpop.f32.mrb[18].mxu1 }
 0x586   :  { %v3328_v58 = vpack.i.bf16 %v886_v57, %v883_v55  ;;  %v3081_v59 = vpop.f32.mrb[19].mxu1  ;;  %v1062_v57 = vsub.s32 4, %v3878_v45 }
 0x588   :  { %3329 = vrot.lane.b32.xlu1 %v3328_v58, %s3724_s9 }
 0x5c3   :  { %v3320_v60 = vpop.permute.xlu1 %3319 }
 0x5c4   :  { %v3322_v63 = vunpack.i.h.bf16 %v3320_v60  ;;  %v3321_v1 = vunpack.i.l.bf16 %v3320_v60 }
 0x5c6   :  { %v915_v5 = vsel %vm408_vm1, %v520_v29, %v3322_v63  ;;  %v914_v6 = vsel %vm408_vm1, %v517_v27, %v3321_v1  ;;  %v3388_v29 = vld [vmem:[%s4380_s5] sm:$0xff]   ;;  %v1068_v63 = vsub.s32 5, %v3878_v45 }
 0x5c7   :  { %3103 = vmatpush3.bf16.msra.mxu1 %v3388_v29 }
 0x5c8   :  { %3104 = vmatprep.subr.bf16.mxu1 %v3721_v0 }
 0x5cb   :  { %v3325_v61 = vpop.permute.xlu0 %3324  ;;  %3105 = vmatpush3.bf16.msra.mxu1 %v3389_v30 }
 0x5cc   :  { %v3327_v2 = vunpack.i.h.bf16 %v3325_v61  ;;  %v3326_v3 = vunpack.i.l.bf16 %v3325_v61  ;;  %3106 = vmatprep.subr.bf16.mxu1 %v3721_v0  ;;  %v1063_v61 = vrot.slane %v3881_v47, %v1062_v57 }
 0x5ce   :  { %v917_v9 = vsel %vm916_vm3, %v914_v6, %v3326_v3  ;;  %v918_v10 = vsel %vm916_vm3, %v915_v5, %v3327_v2  ;;  %v1069_v5 = vrot.slane %v3881_v47, %v1068_v63 }
 0x5cf   :  { %3107 = vmatpush3.bf16.msra.mxu1 %v3390_v31 }
 0x5d0   :  { %3108 = vmatprep.subr.bf16.mxu1 %v3721_v0 }
 0x5d3   :  { %3109 = vmatpush3.bf16.msra.mxu1 %v3391_v32 }
 0x5d4   :  { %3110 = vmatprep.subr.bf16.mxu1 %v3721_v0 }
 0x5d7   :  { %3111 = vmatpush3.bf16.msra.mxu1 %v3392_v34 }
 0x5d8   :  { %3112 = vmatprep.subr.bf16.mxu1 %v3721_v0 }
 0x5db   :  { %3113 = vmatpush3.bf16.msra.mxu1 %v3393_v36 }
 0x5dc   :  { %3114 = vmatprep.subr.bf16.mxu1 %v3721_v0 }
 0x5df   :  { %3115 = vmatpush3.bf16.msra.mxu1 %v3394_v37 }
 0x5e0   :  { %3116 = vmatprep.subr.bf16.mxu1 %v3721_v0 }
 0x5e3   :  { %3117 = vmatpush3.bf16.msra.mxu1 %v3395_v38 }
 0x5fa   :  { %v3330_v4 = vpop.permute.xlu1 %3329 }
 0x5fb   :  { %v3332_v7 = vunpack.i.h.bf16 %v3330_v4  ;;  %v3331_v8 = vunpack.i.l.bf16 %v3330_v4 }
 0x5fd   :  { %v920_v11 = vsel %vm919_vm4, %v917_v9, %v3331_v8  ;;  %v921_v12 = vsel %vm919_vm4, %v918_v10, %v3332_v7  ;;  %v3396_v10 = vld [vmem:[#allocation5] sm:$0xff]  }
 0x5fe   :  { %v922_v13 = vpack.c.bf16 %v921_v12, %v920_v11  ;;  %v3397_v11 = vld [vmem:[#allocation5 + $0x8] sm:$0xff]   ;;  %v3398_v12 = vld [vmem:[#allocation5 + $0x10] sm:$0xff]  }
 0x600   :  { %3099 = vmatmul.mubr.bf16.vlgmr.msra.gmra.mrb[20].mxu0 %v922_v13  ;;  %v3399_v13 = vld [vmem:[#allocation5 + $0x18] sm:$0xff]  }
 0x601   :  { %3138 = vmatprep.mubr.msk.bf16.mxu0 %vm3723_vm0, %v3721_v0  ;;  %3123 = vmatpush3.bf16.msra.mxu0 %v3396_v10  ;;  %v3422_v10 = vld [vmem:[#allocation2 + $0x124] ss:$12 sps:$4 sm:$0xff]  }
 0x602   :  { %3124 = vmatprep.subr.bf16.mxu0 %v3721_v0 }
 0x605   :  { %3125 = vmatpush3.bf16.msra.mxu0 %v3397_v11  ;;  %v3423_v11 = vld [vmem:[#allocation2 + $0x128] ss:$12 sps:$4 sm:$0xff]  }
 0x606   :  { %3126 = vmatprep.subr.bf16.mxu0 %v3721_v0 }
 0x609   :  { %3127 = vmatpush3.bf16.msra.mxu0 %v3398_v12  ;;  %v3426_v12 = vld [vmem:[#allocation2 + $0x13c] ss:$12 sps:$4 sm:$0xff]  }
 0x60a   :  { %3128 = vmatprep.subr.bf16.mxu0 %v3721_v0 }
 0x60d   :  { %3129 = vmatpush3.bf16.msra.mxu0 %v3399_v13  ;;  %v3424_v13 = vld [vmem:[#allocation2 + $0x138] ss:$12 sps:$4 sm:$0xff]  }
 0x60e   :  { %3130 = vmatprep.subr.bf16.mxu0 %v3721_v0 }
 0x6d3   :  { %v1025_v15 = vpop.f32.mrb[20].mxu0 }
 0x6d4   :  { %v1026_v16 = vadd.f32 %v1025_v15, %v942_v14  ;;  %v3100_v17 = vpop.f32.mrb[21].mxu0  ;;  %v3402_v15 = vld [vmem:[#allocation5 + $0x30] sm:$0xff]  }
 0x6d5   :  { %v1028_v18 = vpop.f32.mrb[22].mxu0  ;;  %v1091_v17 = vsub.s32 6, %v3878_v45 }
 0x6d6   :  { %v4042_v21 = vadd.f32 %v3566_v19, %v1026_v16  ;;  %v1029_v22 = vadd.f32 %v1028_v18, %v942_v14  ;;  %v3101_v23 = vpop.f32.mrb[23].mxu0  ;;  %v3400_v14 = vld [vmem:[#allocation5 + $0x20] sm:$0xff]   ;;  %v3403_v16 = vld [vmem:[#allocation5 + $0x38] sm:$0xff]  }
 0x6d7   :  { %3131 = vmatpush3.bf16.msra.mxu0 %v3400_v14  ;;  %v1092_v18 = vrot.slane %v3881_v47, %v1091_v17  ;;  %v3427_v14 = vld [vmem:[#allocation2 + $0x140] ss:$12 sps:$4 sm:$0xff]  }
 0x6d8   :  { %v4047_v25 = vadd.f32 %v3567_v24, %v1029_v22  ;;  %1034 = vadd.xlane.f32.xlu0 %v4042_v21  ;;  %v1040_v27 = vmul.f32 %v4042_v21, %v4042_v21  ;;  %3132 = vmatprep.subr.bf16.mxu0 %v3721_v0 }
 0x6da   :  { %1036 = vadd.xlane.f32.xlu1 %v4047_v25  ;;  %v1041_v28 = vmul.f32 %v4047_v25, %v4047_v25 }
 0x6dc   :  { %1042 = vadd.xlane.f32.xlu0 %v1040_v27 }
 0x6e0   :  { %1044 = vadd.xlane.f32.xlu0 %v1041_v28 }
 0x765   :  { %v1035_v39 = vpop.xlane.xlu0 %1034 }
 0x766   :  { %v1038_v40 = vmul.f32 0.03125, %v1035_v39 }
 0x767   :  { %v1037_v41 = vpop.xlane.xlu1 %1036 }
 0x768   :  { %v1048_v43 = vmul.f32 %v1038_v40, %v1038_v40  ;;  %v1039_v44 = vmul.f32 0.03125, %v1037_v41  ;;  %v1052_v58 = vsub.f32 %v4042_v21, %v1038_v40 }
 0x769   :  { %v1043_v42 = vpop.xlane.xlu0 %1042 }
 0x76a   :  { %v1046_v48 = vmul.f32 0.03125, %v1043_v42  ;;  %v1049_v51 = vmul.f32 %v1039_v44, %v1039_v44  ;;  %v1053_v1 = vsub.f32 %v4047_v25, %v1039_v44  ;;  %v3404_v44 = vld [vmem:[#allocation2 + $0xc0] ss:$12 sps:$4 sm:$0xff]  }
 0x76c   :  { %v1050_v49 = vsub.f32 %v1046_v48, %v1048_v43  ;;  %v3406_v48 = vld [vmem:[#allocation2 + $0xc4] ss:$12 sps:$4 sm:$0xff]  }
 0x76d   :  { %v1045_v50 = vpop.xlane.xlu0 %1044  ;;  %1526 = vmatprep.subr.bf16.mxu1 %v3406_v48 }
 0x76e   :  { %v1054_v53 = vadd.f32 1e-05, %v1050_v49  ;;  %v1047_v54 = vmul.f32 0.03125, %v1045_v50  ;;  %v1217_v49 = vsub.s32 7, %v3878_v45  ;;  %v3460_v45 = vld [vmem:[#allocation10] sm:$0xff]  }
 0x770   :  { %3504 = vrsqrt.f32 %v1054_v53  ;;  %v1051_v55 = vsub.f32 %v1047_v54, %v1049_v51  ;;  %v1218_v50 = vrot.slane %v3881_v47, %v1217_v49 }
 0x772   :  { %v1055_v56 = vadd.f32 1e-05, %v1051_v55 }
 0x774   :  { %3506 = vrsqrt.f32 %v1055_v56 }
 0x77a   :  { %v3505_v59 = vpop.eup %3504 }
 0x77b   :  { %v1058_v60 = vmul.f32 %v3505_v59, %v1052_v58 }
 0x77d   :  { %v1064_v4 = vmul.f32 %v1063_v61, %v1058_v60 }
 0x77e   :  { %v3507_v2 = vpop.eup %3506 }
 0x77f   :  { %v1059_v3 = vmul.f32 %v3507_v2, %v1053_v1  ;;  %v1070_v7 = vadd.f32 %v1069_v5, %v1064_v4  ;;  %v3407_v1 = vld [vmem:[#allocation2 + $0xc8] ss:$12 sps:$4 sm:$0xff]   ;;  %v3408_v2 = vld [vmem:[#allocation2 + $0xd8] ss:$12 sps:$4 sm:$0xff]   ;;  %v3412_v4 = vld [vmem:[#allocation2 + $0xf0] ss:$12 sps:$4 sm:$0xff]  }
 0x781   :  { %v1065_v6 = vmul.f32 %v1063_v61, %v1059_v3  ;;  %v3414_v3 = vld [vmem:[#allocation2 + $0xf4] ss:$12 sps:$4 sm:$0xff]  }
 0x783   :  { %v1071_v8 = vadd.f32 %v1069_v5, %v1065_v6  ;;  %v3415_v5 = vld [vmem:[#allocation2 + $0xf8] ss:$12 sps:$4 sm:$0xff]  }
 0x784   :  { %v3418_v6 = vld [vmem:[#allocation2 + $0x10c] ss:$12 sps:$4 sm:$0xff]  }
 0x785   :  { %v1072_v9 = vpack.c.bf16 %v1071_v8, %v1070_v7  ;;  %v3416_v7 = vld [vmem:[#allocation2 + $0x108] ss:$12 sps:$4 sm:$0xff]   ;;  %v3419_v8 = vld [vmem:[#allocation2 + $0x110] ss:$12 sps:$4 sm:$0xff]  }
 0x787   :  { %3119 = vmatmul.mubr.bf16.vlgmr.msra.gmra.mrb[20].mxu1 %v1072_v9  ;;  %v3420_v9 = vld [vmem:[#allocation2 + $0x120] ss:$12 sps:$4 sm:$0xff]  }
 0x788   :  { %1558 = vmatprep.mubr.bf16.mxu1 %v3722_v26  ;;  %v3401_v26 = vld [vmem:[#allocation5 + $0x28] sm:$0xff]   ;;  %1527 = vmatpush1.bf16.msra.mxu1 %v3404_v44 }
 0x789   :  { %3133 = vmatpush3.bf16.msra.mxu0 %v3401_v26  ;;  %v3430_v26 = vld [vmem:[#allocation2 + $0x154] ss:$12 sps:$4 sm:$0xff]  }
 0x78a   :  { %3134 = vmatprep.subr.bf16.mxu0 %v3721_v0 }
 0x78d   :  { %3135 = vmatpush3.bf16.msra.mxu0 %v3402_v15  ;;  %v3428_v15 = vld [vmem:[#allocation2 + $0x150] ss:$12 sps:$4 sm:$0xff]  }
 0x78e   :  { %3136 = vmatprep.subr.bf16.mxu0 %v3721_v0 }
 0x791   :  { %3137 = vmatpush3.bf16.msra.mxu0 %v3403_v16  ;;  %v3431_v16 = vld [vmem:[#allocation2 + $0x158] ss:$12 sps:$4 sm:$0xff]  }
 0x792   :  { %3142 = vmatprep.subr.bf16.mxu0 %v3721_v0 }
 0x85a   :  { %v1175_v19 = vpop.f32.mrb[20].mxu1 }
 0x85b   :  { %v1176_v22 = vadd.f32 %v1175_v19, %v1092_v18  ;;  %v3120_v23 = vpop.f32.mrb[21].mxu1  ;;  %v3432_v19 = vld [vmem:[#allocation2 + $0x168] ss:$12 sps:$4 sm:$0xff]  }
 0x85c   :  { %v1178_v24 = vpop.f32.mrb[22].mxu1 }
 0x85d   :  { %v2787_v27 = vmul.f32 -1.702, %v1176_v22  ;;  %v1179_v28 = vadd.f32 %v1178_v24, %v1092_v18  ;;  %v3121_v29 = vpop.f32.mrb[23].mxu1  ;;  %v3434_v18 = vld [vmem:[#allocation2 + $0x16c] ss:$12 sps:$4 sm:$0xff]  }
 0x85f   :  { %v1186_v30 = vmul.f32 1.442695, %v2787_v27  ;;  %v2788_v31 = vmul.f32 -1.702, %v1179_v28 }
 0x861   :  { %3508 = vpow2.f32 %v1186_v30  ;;  %v1188_v32 = vmul.f32 1.442695, %v2788_v31 }
 0x863   :  { %3510 = vpow2.f32 %v1188_v32 }
 0x86b   :  { %v3509_v34 = vpop.eup %3508 }
 0x86c   :  { %v1190_v36 = vadd.f32 1.0, %v3509_v34 }
 0x86d   :  { %v3511_v37 = vpop.eup %3510 }
 0x86e   :  { %3512 = vrcp.f32 %v1190_v36  ;;  %v1191_v38 = vadd.f32 1.0, %v3511_v37 }
 0x870   :  { %3514 = vrcp.f32 %v1191_v38 }
 0x878   :  { %v3513_v39 = vpop.eup %3512 }
 0x879   :  { %v1196_v41 = vmul.f32 %v3513_v39, %v1176_v22  ;;  %v3435_v22 = vld [vmem:[#allocation2 + $0x170] ss:$12 sps:$4 sm:$0xff]  }
 0x87a   :  { %v3515_v40 = vpop.eup %3514 }
 0x87b   :  { %v1197_v42 = vmul.f32 %v3515_v40, %v1179_v28 }
 0x87d   :  { %v1198_v43 = vpack.c.bf16 %v1197_v42, %v1196_v41  ;;  %v4136_v41 = vld [vmem:[#allocation7 + $0x18] sm:$0xff] }
 0x87f   :  { %3139 = vmatmul.mubr.bf16.vlgmr.msra.gmra.mrb[24].mxu0 %v1198_v43  ;;  %v1343_v43 = vrot.slane %v4136_v41, %v138_v46  ;;  %v1313_v46 = vld [vmem:[#allocation7 + $0x28] sm:$0xff] }
 0x880   :  { %3158 = vmatprep.mubr.msk.bf16.mxu0 %vm3723_vm0, %v3721_v0  ;;  %3143 = vmatpush3.bf16.msra.mxu0 %v3407_v1  ;;  %v1312_v1 = vld [vmem:[#allocation7 + $0x20] sm:$0xff] }
 0x881   :  { %3144 = vmatprep.subr.bf16.mxu0 %v3721_v0 }
 0x952   :  { %v1301_v51 = vpop.f32.mrb[24].mxu0 }
 0x953   :  { %v1302_v53 = vadd.f32 %v1301_v51, %v1218_v50  ;;  %v3140_v54 = vpop.f32.mrb[25].mxu0 }
 0x954   :  { %v1304_v55 = vpop.f32.mrb[26].mxu0 }
 0x955   :  { %v4116_v56 = vadd.f32 %v1302_v53, %v4042_v21  ;;  %v1305_v58 = vadd.f32 %v1304_v55, %v1218_v50  ;;  %v3141_v59 = vpop.f32.mrb[27].mxu0  ;;  %v3410_v21 = vld [vmem:[#allocation2 + $0xdc] ss:$12 sps:$4 sm:$0xff]   ;;  %v1349_v55 = vrot.slane %v4136_v41, %v144_v52 }
 0x956   :  { %1528 = vmatprep.subr.bf16.mxu1 %v3410_v21  ;;  %v1389_v21 = vrot.slane %v4136_v41, %v3897_v62 }
 0x957   :  { %v4119_v60 = vadd.f32 %v1305_v58, %v4047_v25  ;;  %1314 = vadd.xlane.f32.xlu0 %v4116_v56  ;;  %v1320_v61 = vmul.f32 %v4116_v56, %v4116_v56  ;;  %v3411_v25 = vld [vmem:[#allocation2 + $0xe0] ss:$12 sps:$4 sm:$0xff]   ;;  %1529 = vmatpush1.bf16.msra.mxu1 %v3408_v2  ;;  %v1397_v2 = vrot.slane %v1313_v46, %v3897_v62 }
 0x958   :  { %3145 = vmatpush3.bf16.msra.mxu0 %v3411_v25  ;;  %1530 = vmatprep.subr.bf16.mxu1 %v3414_v3  ;;  %v1393_v3 = vrot.slane %v1312_v1, %v3897_v62 }
 0x959   :  { %1316 = vadd.xlane.f32.xlu1 %v4119_v60  ;;  %v1321_v47 = vmul.f32 %v4119_v60, %v4119_v60  ;;  %3146 = vmatprep.subr.bf16.mxu0 %v3721_v0 }
 0x95b   :  { %1322 = vadd.xlane.f32.xlu0 %v1320_v61  ;;  %1531 = vmatpush1.bf16.msra.mxu1 %v3412_v4 }
 0x95c   :  { %3147 = vmatpush3.bf16.msra.mxu0 %v3415_v5  ;;  %1532 = vmatprep.subr.bf16.mxu1 %v3418_v6 }
 0x95d   :  { %1324 = vadd.xlane.f32.xlu1 %v1321_v47  ;;  %3148 = vmatprep.subr.bf16.mxu0 %v3721_v0 }
 0x95f   :  { %1533 = vmatpush1.bf16.msra.mxu1 %v3416_v7 }
 0x960   :  { %3149 = vmatpush3.bf16.msra.mxu0 %v3419_v8  ;;  %1534 = vmatprep.subr.bf16.mxu1 %v3422_v10 }
 0x961   :  { %3150 = vmatprep.subr.bf16.mxu0 %v3721_v0 }
 0x963   :  { %1535 = vmatpush1.bf16.msra.mxu1 %v3420_v9 }
 0x964   :  { %3151 = vmatpush3.bf16.msra.mxu0 %v3423_v11  ;;  %1536 = vmatprep.subr.bf16.mxu1 %v3426_v12 }
 0x965   :  { %3152 = vmatprep.subr.bf16.mxu0 %v3721_v0 }
 0x967   :  { %1537 = vmatpush1.bf16.msra.mxu1 %v3424_v13 }
 0x968   :  { %3153 = vmatpush3.bf16.msra.mxu0 %v3427_v14  ;;  %1538 = vmatprep.subr.bf16.mxu1 %v3430_v26 }
 0x969   :  { %3154 = vmatprep.subr.bf16.mxu0 %v3721_v0 }
 0x96b   :  { %1539 = vmatpush1.bf16.msra.mxu1 %v3428_v15 }
 0x96c   :  { %3155 = vmatpush3.bf16.msra.mxu0 %v3431_v16  ;;  %1540 = vmatprep.subr.bf16.mxu1 %v3434_v18 }
 0x96d   :  { %3156 = vmatprep.subr.bf16.mxu0 %v3721_v0 }
 0x96f   :  { %1541 = vmatpush1.bf16.msra.mxu1 %v3432_v19 }
 0x970   :  { %3157 = vmatpush3.bf16.msra.mxu0 %v3435_v22  ;;  %3162 = vmatprep.subr.bf16.mxu1 %v3721_v0 }
 0x971   :  { %3186 = vmatprep.subr.bf16.mxu0 %v3721_v0 }
 0x9e4   :  { %v1315_v23 = vpop.xlane.xlu0 %1314 }
 0x9e5   :  { %v1318_v24 = vmul.f32 0.03125, %v1315_v23 }
 0x9e6   :  { %v1317_v27 = vpop.xlane.xlu1 %1316 }
 0x9e7   :  { %v1319_v28 = vmul.f32 0.03125, %v1317_v27  ;;  %v1328_v30 = vmul.f32 %v1318_v24, %v1318_v24  ;;  %v1332_v42 = vsub.f32 %v4116_v56, %v1318_v24 }
 0x9e8   :  { %v1323_v29 = vpop.xlane.xlu0 %1322 }
 0x9e9   :  { %v1326_v31 = vmul.f32 0.03125, %v1323_v29  ;;  %v1329_v34 = vmul.f32 %v1319_v28, %v1319_v28  ;;  %v1333_v48 = vsub.f32 %v4119_v60, %v1319_v28 }
 0x9ea   :  { %v1325_v32 = vpop.xlane.xlu1 %1324 }
 0x9eb   :  { %v1330_v36 = vsub.f32 %v1326_v31, %v1328_v30  ;;  %v1327_v37 = vmul.f32 0.03125, %v1325_v32 }
 0x9ed   :  { %v1334_v38 = vadd.f32 1e-05, %v1330_v36  ;;  %v1331_v39 = vsub.f32 %v1327_v37, %v1329_v34 }
 0x9ef   :  { %3516 = vrsqrt.f32 %v1334_v38  ;;  %v1335_v40 = vadd.f32 1e-05, %v1331_v39 }
 0x9f1   :  { %3518 = vrsqrt.f32 %v1335_v40 }
 0x9f9   :  { %v3517_v44 = vpop.eup %3516 }
 0x9fa   :  { %v1338_v50 = vmul.f32 %v3517_v44, %v1332_v42 }
 0x9fb   :  { %v3519_v51 = vpop.eup %3518 }
 0x9fc   :  { %v1339_v53 = vmul.f32 %v3519_v51, %v1333_v48  ;;  %v1344_v54 = vmul.f32 %v1343_v43, %v1338_v50 }
 0x9fe   :  { %v1345_v58 = vmul.f32 %v1343_v43, %v1339_v53  ;;  %v1350_v59 = vadd.f32 %v1349_v55, %v1344_v54 }
 0xa00   :  { %v1351_v61 = vadd.f32 %v1349_v55, %v1345_v58 }
 0xa02   :  { %v1352_v47 = vpack.c.bf16 %v1351_v61, %v1350_v59 }
 0xa04   :  { %1559 = vmatmul.mubr.bf16.vlgmr.msra.gmra.mrb[24].mxu1 %v1352_v47  ;;  %3159 = vmatmul.mubr.bf16.vlgmr.msra.gmra.mrb[28].mxu0 %v1352_v47 }
 0xa05   :  { %3164 = vmatprep.mubr.msk.bf16.mxu1 %vm3723_vm0, %v3721_v0  ;;  %3188 = vmatprep.mubr.msk.bf16.mxu0 %vm3723_vm0, %v3721_v0 }
 0xad7   :  { %v1560_v52 = vpop.f32.mrb[24].mxu1  ;;  %v1603_v25 = vpop.f32.mrb[28].mxu0 }
 0xad8   :  { %v1562_v4 = vpop.f32.mrb[25].mxu1  ;;  %v3160_v5 = vpop.f32.mrb[29].mxu0  ;;  %v1561_v8 = vadd.f32 %v1560_v52, %v1389_v21  ;;  %v1604_v9 = vadd.f32 %v1603_v25, %v1397_v2 }
 0xad9   :  { %v1564_v6 = vpop.f32.mrb[26].mxu1  ;;  %v1606_v7 = vpop.f32.mrb[30].mxu0  ;;  %v1563_v14 = vadd.f32 %v1562_v4, %v1393_v3 }
 0xada   :  { %v1565_v10 = vadd.f32 %v1564_v6, %v1389_v21  ;;  %v1607_v11 = vadd.f32 %v1606_v7, %v1397_v2  ;;  %v1566_v12 = vpop.f32.mrb[27].mxu1  ;;  %v3161_v13 = vpop.f32.mrb[31].mxu0 }
 0xadb   :  { %v1567_v26 = vadd.f32 %v1566_v12, %v1393_v3 }
 0xadc   :  { %v1610_v15 = vpack.c.bf16 %v1565_v10, %v1561_v8  ;;  %v4154_v16 = vpack.c.bf16 %v1607_v11, %v1604_v9  ;;  %v3568_v9 = vld [vmem:[%s4376_s1] sm:$0xff] }
 0xadd   :  { %v1611_v18 = vpack.c.bf16 %v1567_v26, %v1563_v14 }
 0xadf   :  { %v1617_v19 = vsel %vm408_vm1, %v1611_v18, 0 }
 0xae0   :  { %3163 = vmatpush3.bf16.xpose.msra.mxu1 %v1617_v19 }
 0xae1   :  { %3168 = vmatprep.subr.bf16.mxu1 %v3721_v0 }
 0xae7   :  { %3165 = vmatmul.mubr.msk.bf16.vlgmr.msra.gmra.mrb[28].mxu1 %vm408_vm1, %v1610_v15 }
 0xae8   :  { %3169 = vmatpush3.bf16.msra.mxu1 %v4154_v16  ;;  %3170 = vmatprep.mubr.msk.bf16.mxu1 %vm3723_vm0, %v3721_v0 }
 0xae9   :  { %3174 = vmatprep.subr.bf16.mxu1 %v3721_v0 }
 0xbba   :  { %v1653_v62 = vpop.f32.mrb[28].mxu1 }
 0xbbb   :  { %v1654_v22 = vadd.f32 %v1653_v62, %v3936_v33  ;;  %v3166_v23 = vpop.f32.mrb[29].mxu1 }
 0xbbc   :  { %v1656_v24 = vpop.f32.mrb[30].mxu1 }
 0xbbd   :  { %v1657_v27 = vadd.f32 %v1656_v24, %v3941_v35  ;;  %v3167_v28 = vpop.f32.mrb[31].mxu1  ;;  %v1660_v29 = vsel %vm456_vm2, %v1654_v22, -inf }
 0xbbe   :  { %1661 = vmax.xlane.f32.xlu0 %v1660_v29 }
 0xbbf   :  { %v1663_v30 = vsel %vm456_vm2, %v1657_v27, -inf }
 0xbc0   :  { %1664 = vmax.xlane.f32.xlu1 %v1663_v30 }
 0xc4b   :  { %v1662_v31 = vpop.xlane.xlu0 %1661 }
 0xc4c   :  { %v1666_v32 = vsub.f32 %v1654_v22, %v1662_v31 }
 0xc4d   :  { %v1665_v34 = vpop.xlane.xlu1 %1664 }
 0xc4e   :  { %v1668_v36 = vmul.f32 1.442695, %v1666_v32  ;;  %v1667_v37 = vsub.f32 %v1657_v27, %v1665_v34 }
 0xc50   :  { %3520 = vpow2.f32 %v1668_v36  ;;  %v1670_v38 = vmul.f32 1.442695, %v1667_v37 }
 0xc52   :  { %3522 = vpow2.f32 %v1670_v38 }
 0xc5a   :  { %v3521_v33 = vpop.eup %3520 }
 0xc5b   :  { %v1672_v39 = vsel %vm456_vm2, %v3521_v33, 0.0 }
 0xc5c   :  { %v3523_v40 = vpop.eup %3522  ;;  %1673 = vadd.xlane.f32.xlu0 %v1672_v39 }
 0xc5d   :  { %v1675_v35 = vsel %vm456_vm2, %v3523_v40, 0.0 }
 0xc5e   :  { %1676 = vadd.xlane.f32.xlu1 %v1675_v35 }
 0xc6f   :  { %1728 = vrot.lane.b32.xlu1 %v1610_v15, %s3724_s9 }
 0xc72   :  { %1731 = vrot.lane.b32.xlu0 %v1611_v18, %s3724_s9 }
 0xc73   :  { %1853 = vrot.lane.b32.xlu1 %v1611_v18, %s3711_s23 }
 0xc76   :  { %1974 = vrot.lane.b32.xlu0 %v1611_v18, %s3725_s24 }
 0xc77   :  { %1851 = vrot.lane.b32.xlu1 %v1610_v15, %s3711_s23 }
 0xc7b   :  { %1972 = vrot.lane.b32.xlu1 %v1610_v15, %s3725_s24  ;;  %v3569_v15 = vld [vmem:[%s4376_s1 + $0x8] sm:$0xff] }
 0xce9   :  { %v1674_v42 = vpop.xlane.xlu0 %1673 }
 0xcea   :  { %3524 = vrcp.f32 %v1674_v42 }
 0xceb   :  { %v1677_v43 = vpop.xlane.xlu1 %1676 }
 0xcec   :  { %3526 = vrcp.f32 %v1677_v43 }
 0xced   :  { %v1732_v48 = vpop.permute.xlu0 %1731 }
 0xcee   :  { %v1737_v47 = vsel %vm408_vm1, %v1732_v48, 0 }
 0xcef   :  { %v1729_v44 = vpop.permute.xlu1 %1728 }
 0xcf1   :  { %v1975_v59 = vpop.permute.xlu0 %1974 }
 0xcf2   :  { %v1980_v1 = vsel %vm408_vm1, %v1975_v59, 0 }
 0xcf3   :  { %v1854_v50 = vpop.permute.xlu1 %1853 }
 0xcf4   :  { %v3525_v51 = vpop.eup %3524  ;;  %v1859_v53 = vsel %vm408_vm1, %v1854_v50, 0 }
 0xcf5   :  { %3187 = vmatpush3.bf16.xpose.msra.mxu0 %v1859_v53  ;;  %v1680_v55 = vmul.f32 %v3525_v51, %v3521_v33 }
 0xcf6   :  { %v3527_v54 = vpop.eup %3526  ;;  %3198 = vmatprep.subr.bf16.mxu0 %v3721_v0 }
 0xcf7   :  { %v1681_v58 = vmul.f32 %v3527_v54, %v3523_v40  ;;  %v1852_v46 = vpop.permute.xlu1 %1851 }
 0xcf9   :  { %v1682_v61 = vpack.c.bf16 %v1681_v58, %v1680_v55 }
 0xcfb   :  { %3171 = vmatmul.mubr.msk.bf16.vlgmr.msra.gmra.mrb[32].mxu1 %vm456_vm2, %v1682_v61  ;;  %v1973_v21 = vpop.permute.xlu1 %1972 }
 0xcfc   :  { %3175 = vmatpush3.bf16.xpose.msra.mxu1 %v1737_v47  ;;  %3189 = vmatmul.mubr.msk.bf16.vlgmr.msra.gmra.mrb[32].mxu0 %vm408_vm1, %v1852_v46 }
 0xcfd   :  { %3199 = vmatpush3.bf16.xpose.msra.mxu0 %v1980_v1  ;;  %3176 = vmatprep.mubr.msk.bf16.mxu1 %vm3723_vm0, %v3721_v0 }
 0xcfe   :  { %3200 = vmatprep.mubr.msk.bf16.mxu0 %vm3723_vm0, %v3721_v0  ;;  %3180 = vmatprep.subr.bf16.mxu1 %v3721_v0 }
 0xcff   :  { %3210 = vmatprep.subr.bf16.mxu0 %v3721_v0 }
 0xd03   :  { %3177 = vmatmul.mubr.msk.bf16.vlgmr.msra.gmra.mrb[36].mxu1 %vm408_vm1, %v1729_v44 }
 0xd04   :  { %3201 = vmatmul.mubr.msk.bf16.vlgmr.msra.gmra.mrb[36].mxu0 %vm408_vm1, %v1973_v21  ;;  %3182 = vmatprep.mubr.msk.bf16.mxu1 %vm3723_vm0, %v3721_v0 }
 0xd05   :  { %3226 = vmatprep.mubr.msk.bf16.mxu0 %vm3723_vm0, %v3721_v0 }
 0xdce   :  { %v4193_v2 = vpop.f32.mrb[32].mxu1 }
 0xdcf   :  { %v3172_v52 = vpop.f32.mrb[33].mxu1  ;;  %v1895_v25 = vpop.f32.mrb[32].mxu0 }
 0xdd0   :  { %v4195_v3 = vpop.f32.mrb[34].mxu1  ;;  %v3190_v4 = vpop.f32.mrb[33].mxu0  ;;  %v1896_v26 = vadd.f32 %v3568_v9, %v1895_v25 }
 0xdd1   :  { %v3173_v5 = vpop.f32.mrb[35].mxu1  ;;  %v1898_v6 = vpop.f32.mrb[34].mxu0 }
 0xdd2   :  { %v3191_v7 = vpop.f32.mrb[35].mxu0  ;;  %v1899_v28 = vadd.f32 %v3569_v15, %v1898_v6  ;;  %v1902_v29 = vsel %vm456_vm2, %v1896_v26, -inf }
 0xdd4   :  { %v1905_v32 = vsel %vm456_vm2, %v1899_v28, -inf }
 0xdd6   :  { %v1773_v8 = vpop.f32.mrb[36].mxu1 }
 0xdd7   :  { %v1774_v10 = vadd.f32 %v3568_v9, %v1773_v8  ;;  %v3178_v11 = vpop.f32.mrb[37].mxu1  ;;  %v2016_v12 = vpop.f32.mrb[36].mxu0 }
 0xdd8   :  { %v1776_v13 = vpop.f32.mrb[38].mxu1  ;;  %v3202_v14 = vpop.f32.mrb[37].mxu0  ;;  %v2017_v31 = vadd.f32 %v3568_v9, %v2016_v12 }
 0xdd9   :  { %v1777_v18 = vadd.f32 %v3569_v15, %v1776_v13  ;;  %v3179_v19 = vpop.f32.mrb[39].mxu1  ;;  %v2019_v62 = vpop.f32.mrb[38].mxu0  ;;  %v1780_v22 = vsel %vm456_vm2, %v1774_v10, -inf }
 0xdda   :  { %1781 = vmax.xlane.f32.xlu0 %v1780_v22  ;;  %v3203_v23 = vpop.f32.mrb[39].mxu0  ;;  %v2020_v24 = vadd.f32 %v3569_v15, %v2019_v62  ;;  %v2023_v34 = vsel %vm456_vm2, %v2017_v31, -inf }
 0xddb   :  { %v1783_v27 = vsel %vm456_vm2, %v1777_v18, -inf }
 0xddc   :  { %1784 = vmax.xlane.f32.xlu1 %v1783_v27  ;;  %v2026_v30 = vsel %vm456_vm2, %v2020_v24, -inf }
 0xdde   :  { %1903 = vmax.xlane.f32.xlu0 %v1902_v29 }
 0xde0   :  { %2027 = vmax.xlane.f32.xlu1 %v2026_v30 }
 0xde2   :  { %1906 = vmax.xlane.f32.xlu0 %v1905_v32 }
 0xde6   :  { %2024 = vmax.xlane.f32.xlu0 %v2023_v34 }
 0xe67   :  { %v1782_v36 = vpop.xlane.xlu0 %1781 }
 0xe68   :  { %v1786_v44 = vsub.f32 %v1774_v10, %v1782_v36 }
 0xe69   :  { %v1785_v37 = vpop.xlane.xlu1 %1784 }
 0xe6a   :  { %v1787_v48 = vsub.f32 %v1777_v18, %v1785_v37  ;;  %v1788_v55 = vmul.f32 1.442695, %v1786_v44  ;;  %v3441_v44 = vld [vmem:[%s4379_s4 + $0x68] sm:$0xff]  }
 0xe6b   :  { %v1904_v38 = vpop.xlane.xlu0 %1903 }
 0xe6c   :  { %v1908_v33 = vsub.f32 %v1896_v26, %v1904_v38  ;;  %v1790_v58 = vmul.f32 1.442695, %v1787_v48  ;;  %v3436_v38 = vld [vmem:[%s4379_s4 + $0x40] sm:$0xff]  }
 0xe6d   :  { %v2028_v39 = vpop.xlane.xlu1 %2027  ;;  %3211 = vmatpush3.bf16.msra.mxu0 %v3436_v38  ;;  %v3451_v38 = vld [vmem:[%s4380_s5 + $0x78] sm:$0xff]  }
 0xe6e   :  { %v1910_v40 = vmul.f32 1.442695, %v1908_v33  ;;  %v2030_v35 = vsub.f32 %v2020_v24, %v2028_v39  ;;  %v3437_v33 = vld [vmem:[%s4379_s4 + $0x48] sm:$0xff]   ;;  %3212 = vmatprep.subr.bf16.mxu0 %v3721_v0  ;;  %v3438_v39 = vld [vmem:[%s4379_s4 + $0x50] sm:$0xff]  }
 0xe6f   :  { %v1907_v42 = vpop.xlane.xlu0 %1906 }
 0xe70   :  { %3528 = vpow2.f32 %v1910_v40  ;;  %v1909_v43 = vsub.f32 %v1899_v28, %v1907_v42  ;;  %v2033_v50 = vmul.f32 1.442695, %v2030_v35  ;;  %v3439_v40 = vld [vmem:[%s4379_s4 + $0x58] sm:$0xff]   ;;  %v3440_v35 = vld [vmem:[%s4379_s4 + $0x60] sm:$0xff]  }
 0xe71   :  { %3213 = vmatpush3.bf16.msra.mxu0 %v3437_v33 }
 0xe72   :  { %v1912_v51 = vmul.f32 1.442695, %v1909_v43  ;;  %3214 = vmatprep.subr.bf16.mxu0 %v3721_v0 }
 0xe73   :  { %v2025_v53 = vpop.xlane.xlu0 %2024 }
 0xe74   :  { %3530 = vpow2.f32 %v1912_v51  ;;  %v2029_v54 = vsub.f32 %v2017_v31, %v2025_v53  ;;  %v3442_v53 = vld [vmem:[%s4379_s4 + $0x70] sm:$0xff]  }
 0xe75   :  { %3532 = vpow2.f32 %v2033_v50  ;;  %3215 = vmatpush3.bf16.msra.mxu0 %v3438_v39 }
 0xe76   :  { %v2031_v59 = vmul.f32 1.442695, %v2029_v54  ;;  %3216 = vmatprep.subr.bf16.mxu0 %v3721_v0 }
 0xe78   :  { %3534 = vpow2.f32 %v2031_v59 }
 0xe79   :  { %3536 = vpow2.f32 %v1788_v55  ;;  %3217 = vmatpush3.bf16.msra.mxu0 %v3439_v40 }
 0xe7a   :  { %v3529_v61 = vpop.eup %3528  ;;  %3538 = vpow2.f32 %v1790_v58  ;;  %3218 = vmatprep.subr.bf16.mxu0 %v3721_v0  ;;  %v3443_v58 = vld [vmem:[%s4379_s4 + $0x78] sm:$0xff]  }
 0xe7b   :  { %v1914_v47 = vsel %vm456_vm2, %v3529_v61, 0.0 }
 0xe7c   :  { %1915 = vadd.xlane.f32.xlu0 %v1914_v47 }
 0xe7d   :  { %3219 = vmatpush3.bf16.msra.mxu0 %v3440_v35 }
 0xe7e   :  { %v3531_v46 = vpop.eup %3530  ;;  %3220 = vmatprep.subr.bf16.mxu0 %v3721_v0 }
 0xe7f   :  { %v1917_v1 = vsel %vm456_vm2, %v3531_v46, 0.0  ;;  %v3533_v21 = vpop.eup %3532 }
 0xe80   :  { %1918 = vadd.xlane.f32.xlu1 %v1917_v1  ;;  %v2038_v5 = vsel %vm456_vm2, %v3533_v21, 0.0 }
 0xe81   :  { %3221 = vmatpush3.bf16.msra.mxu0 %v3441_v44 }
 0xe82   :  { %v3535_v52 = vpop.eup %3534  ;;  %3222 = vmatprep.subr.bf16.mxu0 %v3721_v0 }
 0xe83   :  { %v3537_v25 = vpop.eup %3536  ;;  %v2035_v4 = vsel %vm456_vm2, %v3535_v52, 0.0 }
 0xe84   :  { %v3539_v6 = vpop.eup %3538  ;;  %2036 = vadd.xlane.f32.xlu0 %v2035_v4  ;;  %2039 = vadd.xlane.f32.xlu1 %v2038_v5  ;;  %v1792_v7 = vsel %vm456_vm2, %v3537_v25, 0.0 }
 0xe85   :  { %v1795_v8 = vsel %vm456_vm2, %v3539_v6, 0.0  ;;  %3223 = vmatpush3.bf16.msra.mxu0 %v3442_v53 }
 0xe86   :  { %3224 = vmatprep.subr.bf16.mxu0 %v3721_v0 }
 0xe88   :  { %1793 = vadd.xlane.f32.xlu0 %v1792_v7  ;;  %1796 = vadd.xlane.f32.xlu1 %v1795_v8 }
 0xe89   :  { %3225 = vmatpush3.bf16.msra.mxu0 %v3443_v58 }
 0xe8a   :  { %3250 = vmatprep.subr.bf16.mxu0 %v3721_v0 }
 0xe99   :  { %1925 = vrot.lane.b32.xlu1 %v4154_v16, %s3711_s23 }
 0xe9d   :  { %2046 = vrot.lane.b32.xlu1 %v4154_v16, %s3725_s24 }
 0xe9e   :  { %1804 = vrot.lane.b32.xlu0 %v4154_v16, %s3724_s9 }
 0xf09   :  { %v1916_v9 = vpop.xlane.xlu0 %1915 }
 0xf0d   :  { %v1919_v10 = vpop.xlane.xlu1 %1918 }
 0xf11   :  { %v2037_v11 = vpop.xlane.xlu0 %2036  ;;  %v2040_v12 = vpop.xlane.xlu1 %2039 }
 0xf15   :  { %v1794_v13 = vpop.xlane.xlu0 %1793  ;;  %v1797_v14 = vpop.xlane.xlu1 %1796 }
 0xf16   :  { %3540 = vrcp.f32 %v1794_v13 }
 0xf17   :  { %3542 = vrcp.f32 %v1797_v14 }
 0xf18   :  { %3544 = vrcp.f32 %v1919_v10 }
 0xf19   :  { %v1805_v26 = vpop.permute.xlu0 %1804  ;;  %3546 = vrcp.f32 %v1916_v9  ;;  %v1926_v23 = vpop.permute.xlu1 %1925 }
 0xf1a   :  { %3181 = vmatpush3.bf16.msra.mxu1 %v1805_v26  ;;  %3548 = vrcp.f32 %v2037_v11 }
 0xf1b   :  { %3192 = vmatprep.subr.bf16.mxu1 %v3721_v0  ;;  %3550 = vrcp.f32 %v2040_v12 }
 0xf1d   :  { %v2047_v32 = vpop.permute.xlu1 %2046 }
 0xf20   :  { %v3541_v15 = vpop.eup %3540 }
 0xf21   :  { %v3543_v18 = vpop.eup %3542  ;;  %v1800_v19 = vmul.f32 %v3541_v15, %v3537_v25 }
 0xf22   :  { %v1801_v62 = vmul.f32 %v3543_v18, %v3539_v6  ;;  %v3545_v22 = vpop.eup %3544 }
 0xf23   :  { %v3547_v24 = vpop.eup %3546  ;;  %v1923_v27 = vmul.f32 %v3545_v22, %v3531_v46 }
 0xf24   :  { %v1802_v16 = vpack.c.bf16 %v1801_v62, %v1800_v19  ;;  %v1922_v28 = vmul.f32 %v3547_v24, %v3529_v61  ;;  %v3549_v29 = vpop.eup %3548 }
 0xf25   :  { %v3551_v31 = vpop.eup %3550  ;;  %v2043_v34 = vmul.f32 %v3549_v29, %v3535_v52 }
 0xf26   :  { %3183 = vmatmul.mubr.msk.bf16.vlgmr.msra.gmra.mrb[40].mxu1 %vm456_vm2, %v1802_v16  ;;  %v1924_v30 = vpack.c.bf16 %v1923_v27, %v1922_v28  ;;  %v2044_v36 = vmul.f32 %v3551_v31, %v3533_v21  ;;  %v3446_v31 = vld [vmem:[%s4380_s5 + $0x50] sm:$0xff]  }
 0xf27   :  { %3193 = vmatpush3.bf16.msra.mxu1 %v1926_v23  ;;  %3194 = vmatprep.mubr.msk.bf16.mxu1 %vm3723_vm0, %v3721_v0 }
 0xf28   :  { %3204 = vmatprep.subr.bf16.mxu1 %v3721_v0  ;;  %v2045_v37 = vpack.c.bf16 %v2044_v36, %v2043_v34  ;;  %v3448_v34 = vld [vmem:[%s4380_s5 + $0x60] sm:$0xff]   ;;  %v3449_v36 = vld [vmem:[%s4380_s5 + $0x68] sm:$0xff]  }
 0xf2e   :  { %3195 = vmatmul.mubr.msk.bf16.vlgmr.msra.gmra.mrb[44].mxu1 %vm456_vm2, %v1924_v30 }
 0xf2f   :  { %3205 = vmatpush3.bf16.msra.mxu1 %v2047_v32  ;;  %3206 = vmatprep.mubr.msk.bf16.mxu1 %vm3723_vm0, %v3721_v0  ;;  %v3447_v32 = vld [vmem:[%s4380_s5 + $0x58] sm:$0xff]  }
 0xf30   :  { %3230 = vmatprep.subr.bf16.mxu1 %v3721_v0 }
 0xf36   :  { %3207 = vmatmul.mubr.msk.bf16.vlgmr.msra.gmra.mrb[48].mxu1 %vm456_vm2, %v2045_v37  ;;  %v3450_v37 = vld [vmem:[%s4380_s5 + $0x70] sm:$0xff]  }
 0xf37   :  { %3246 = vmatprep.mubr.msk.bf16.mxu1 %vm3723_vm0, %v3721_v0 }
 0xff9   :  { %v1844_v42 = vpop.f32.mrb[40].mxu1 }
 0xffa   :  { %v3184_v43 = vpop.f32.mrb[41].mxu1 }
 0xffb   :  { %v1847_v48 = vpop.f32.mrb[42].mxu1 }
 0xffc   :  { %v3333_v50 = vpack.i.bf16 %v1847_v48, %v1844_v42  ;;  %v3185_v51 = vpop.f32.mrb[43].mxu1 }
 0xffe   :  { %3334 = vrot.lane.b32.xlu1 %v3333_v50, %s3725_s24 }
0x1001   :  { %v1965_v54 = vpop.f32.mrb[44].mxu1 }
0x1002   :  { %v3196_v55 = vpop.f32.mrb[45].mxu1 }
0x1003   :  { %v1968_v59 = vpop.f32.mrb[46].mxu1 }
0x1004   :  { %v3338_v61 = vpack.i.bf16 %v1968_v59, %v1965_v54  ;;  %v3197_v47 = vpop.f32.mrb[47].mxu1 }
0x1006   :  { %3339 = vrot.lane.b32.xlu0 %v3338_v61, %s3711_s23 }
0x1009   :  { %v2086_v46 = vpop.f32.mrb[48].mxu1 }
0x100a   :  { %v3208_v1 = vpop.f32.mrb[49].mxu1 }
0x100b   :  { %v2089_v21 = vpop.f32.mrb[50].mxu1 }
0x100c   :  { %v3343_v52 = vpack.i.bf16 %v2089_v21, %v2086_v46  ;;  %v3209_v25 = vpop.f32.mrb[51].mxu1  ;;  %v2265_v46 = vrot.slane %v4136_v41, %v1062_v57  ;;  %v3453_v57 = vld [vmem:[#allocation5 + $0x48] sm:$0xff]  }
0x100e   :  { %3344 = vrot.lane.b32.xlu1 %v3343_v52, %s3724_s9 }
0x1070   :  { %v3335_v4 = vpop.permute.xlu1 %3334 }
0x1071   :  { %v3337_v6 = vunpack.i.h.bf16 %v3335_v4  ;;  %v3336_v7 = vunpack.i.l.bf16 %v3335_v4  ;;  %v2271_v4 = vrot.slane %v4136_v41, %v1068_v63  ;;  %v3455_v63 = vld [vmem:[#allocation5 + $0x58] sm:$0xff]  }
0x1073   :  { %v2118_v11 = vsel %vm408_vm1, %v4195_v3, %v3337_v6  ;;  %v2117_v12 = vsel %vm408_vm1, %v4193_v2, %v3336_v7  ;;  %v2144_v3 = vrot.slane %v4136_v41, %v941_v20 }
0x1078   :  { %v3340_v5 = vpop.permute.xlu0 %3339 }
0x1079   :  { %v3342_v8 = vunpack.i.h.bf16 %v3340_v5  ;;  %v3341_v9 = vunpack.i.l.bf16 %v3340_v5 }
0x107b   :  { %v2119_v26 = vsel %vm916_vm3, %v2117_v12, %v3341_v9  ;;  %v2120_v15 = vsel %vm916_vm3, %v2118_v11, %v3342_v8  ;;  %v3452_v9 = vld [vmem:[#allocation5 + $0x40] sm:$0xff]   ;;  %v3457_v12 = vld [vmem:[#allocation5 + $0x68] sm:$0xff]  }
0x107c   :  { %v3456_v11 = vld [vmem:[#allocation5 + $0x60] sm:$0xff]  }
0x1080   :  { %v3345_v10 = vpop.permute.xlu1 %3344 }
0x1081   :  { %v3347_v13 = vunpack.i.h.bf16 %v3345_v10  ;;  %v3346_v14 = vunpack.i.l.bf16 %v3345_v10  ;;  %v3454_v10 = vld [vmem:[#allocation5 + $0x50] sm:$0xff]  }
0x1083   :  { %v2121_v18 = vsel %vm919_vm4, %v2119_v26, %v3346_v14  ;;  %v2122_v19 = vsel %vm919_vm4, %v2120_v15, %v3347_v13  ;;  %v3458_v13 = vld [vmem:[#allocation5 + $0x70] sm:$0xff]   ;;  %v3459_v14 = vld [vmem:[#allocation5 + $0x78] sm:$0xff]   ;;  %v2295_v26 = vrot.slane %v4136_v41, %v1091_v17 }
0x1084   :  { %v2123_v62 = vpack.c.bf16 %v2122_v19, %v2121_v18 }
0x1086   :  { %3227 = vmatmul.mubr.bf16.vlgmr.msra.gmra.mrb[40].mxu0 %v2123_v62 }
0x1087   :  { %3266 = vmatprep.mubr.msk.bf16.mxu0 %vm3723_vm0, %v3721_v0  ;;  %3251 = vmatpush3.bf16.msra.mxu0 %v3452_v9 }
0x1088   :  { %3252 = vmatprep.subr.bf16.mxu0 %v3721_v0 }
0x108b   :  { %3253 = vmatpush3.bf16.msra.mxu0 %v3453_v57  ;;  %v2889_v57 = vld [vmem:[#allocation8 + $0x1] ss:$0 sm:$0xff] }
0x108c   :  { %3254 = vmatprep.subr.bf16.mxu0 %v3721_v0 }
0x108f   :  { %3255 = vmatpush3.bf16.msra.mxu0 %v3454_v10 }
0x1090   :  { %3256 = vmatprep.subr.bf16.mxu0 %v3721_v0 }
0x1093   :  { %3257 = vmatpush3.bf16.msra.mxu0 %v3455_v63 }
0x1094   :  { %3258 = vmatprep.subr.bf16.mxu0 %v3721_v0 }
0x1097   :  { %3259 = vmatpush3.bf16.msra.mxu0 %v3456_v11 }
0x1098   :  { %3260 = vmatprep.subr.bf16.mxu0 %v3721_v0 }
0x109b   :  { %3261 = vmatpush3.bf16.msra.mxu0 %v3457_v12 }
0x109c   :  { %3262 = vmatprep.subr.bf16.mxu0 %v3721_v0 }
0x109f   :  { %3263 = vmatpush3.bf16.msra.mxu0 %v3458_v13 }
0x10a0   :  { %3264 = vmatprep.subr.bf16.mxu0 %v3721_v0 }
0x10a3   :  { %3265 = vmatpush3.bf16.msra.mxu0 %v3459_v14 }
0x1159   :  { %v2227_v2 = vpop.f32.mrb[40].mxu0 }
0x115a   :  { %v2228_v16 = vadd.f32 %v2227_v2, %v2144_v3  ;;  %v3228_v22 = vpop.f32.mrb[41].mxu0 }
0x115b   :  { %v2230_v23 = vpop.f32.mrb[42].mxu0 }
0x115c   :  { %v4282_v24 = vadd.f32 %v2228_v16, %v4116_v56  ;;  %v2231_v27 = vadd.f32 %v2230_v23, %v2144_v3  ;;  %v3229_v28 = vpop.f32.mrb[43].mxu0  ;;  %v3444_v56 = vld [vmem:[%s4380_s5 + $0x40] sm:$0xff]  }
0x115d   :  { %3231 = vmatpush3.bf16.msra.mxu1 %v3444_v56 }
0x115e   :  { %v4285_v29 = vadd.f32 %v2231_v27, %v4119_v60  ;;  %2236 = vadd.xlane.f32.xlu0 %v4282_v24  ;;  %v2242_v30 = vmul.f32 %v4282_v24, %v4282_v24  ;;  %3232 = vmatprep.subr.bf16.mxu1 %v3721_v0  ;;  %v3445_v60 = vld [vmem:[%s4380_s5 + $0x48] sm:$0xff]  }
0x1160   :  { %2238 = vadd.xlane.f32.xlu1 %v4285_v29  ;;  %v2243_v20 = vmul.f32 %v4285_v29, %v4285_v29 }
0x1161   :  { %3233 = vmatpush3.bf16.msra.mxu1 %v3445_v60 }
0x1162   :  { %2244 = vadd.xlane.f32.xlu0 %v2242_v30  ;;  %3234 = vmatprep.subr.bf16.mxu1 %v3721_v0 }
0x1165   :  { %3235 = vmatpush3.bf16.msra.mxu1 %v3446_v31 }
0x1166   :  { %2246 = vadd.xlane.f32.xlu0 %v2243_v20  ;;  %3236 = vmatprep.subr.bf16.mxu1 %v3721_v0 }
0x1169   :  { %3237 = vmatpush3.bf16.msra.mxu1 %v3447_v32 }
0x116a   :  { %3238 = vmatprep.subr.bf16.mxu1 %v3721_v0 }
0x116d   :  { %3239 = vmatpush3.bf16.msra.mxu1 %v3448_v34 }
0x116e   :  { %3240 = vmatprep.subr.bf16.mxu1 %v3721_v0 }
0x1171   :  { %3241 = vmatpush3.bf16.msra.mxu1 %v3449_v36  ;;  %v3726_v36 = vmov 0.0|0.0  }
0x1172   :  { %3242 = vmatprep.subr.bf16.mxu1 %v3721_v0  ;;  %3297 = vmatprep.subr.bf16.mxu0 %v3726_v36 }
0x1175   :  { %3243 = vmatpush3.bf16.msra.mxu1 %v3450_v37  ;;  %v2422_v37 = vrot.slane %v4136_v41, %v1217_v49 }
0x1176   :  { %3244 = vmatprep.subr.bf16.mxu1 %v3721_v0 }
0x1179   :  { %3245 = vmatpush3.bf16.msra.mxu1 %v3451_v38 }
0x117a   :  { %3277 = vmatprep.subr.bf16.mxu1 %v3721_v0 }
0x11eb   :  { %v2237_v33 = vpop.xlane.xlu0 %2236 }
0x11ec   :  { %v2240_v39 = vmul.f32 0.03125, %v2237_v33 }
0x11ed   :  { %v2239_v40 = vpop.xlane.xlu1 %2238 }
0x11ee   :  { %v2250_v42 = vmul.f32 %v2240_v39, %v2240_v39  ;;  %v2241_v43 = vmul.f32 0.03125, %v2239_v40  ;;  %v2254_v59 = vsub.f32 %v4282_v24, %v2240_v39 }
0x11ef   :  { %v2245_v35 = vpop.xlane.xlu0 %2244 }
0x11f0   :  { %v2248_v44 = vmul.f32 0.03125, %v2245_v35  ;;  %v2251_v51 = vmul.f32 %v2241_v43, %v2241_v43  ;;  %v2255_v1 = vsub.f32 %v4285_v29, %v2241_v43 }
0x11f2   :  { %v2252_v48 = vsub.f32 %v2248_v44, %v2250_v42 }
0x11f3   :  { %v2247_v50 = vpop.xlane.xlu0 %2246 }
0x11f4   :  { %v2256_v53 = vadd.f32 1e-05, %v2252_v48  ;;  %v2249_v54 = vmul.f32 0.03125, %v2247_v50  ;;  %v2514_v50 = vld [vmem:[%s4377_s2] sm:$0x3]  ;;  %s3727_s2 = smov [#allocation11]  }
0x11f5   :  { %s2728_s30 = sshll.u32 %s3727_s2, 4  ;;  %s2729_s30 = int_to_ptr.vmem [resolvable:$true] %s2728_s30 }
0x11f6   :  { %3552 = vrsqrt.f32 %v2256_v53  ;;  %v2253_v55 = vsub.f32 %v2249_v54, %v2251_v51  ;;  %v3462_v54 = vld [vmem:[#allocation10 + $0x10] sm:$0xff]   ;;  %s3680_s0 = scalar_lea.vmem %s2729_s30, 32  ;;  %p3685_p13 = scmp.lt.s32.totalorder %s2729_s30, %s2729_s30 }
0x11f7   :  { %p3681_p12 = scmp.ne.s32.totalorder %s2729_s30, %s3680_s0  ;;  %p3686_p0 = scmp.lt.s32.totalorder %s3680_s0, %s3680_s0 }
0x11f8   :  { %v2257_v58 = vadd.f32 1e-05, %v2253_v55  ;;  %v3463_v55 = vld [vmem:[#allocation10 + $0x18] sm:$0xff]  }
0x11f9   :  { %p3687_p1 = por %p3686_p0, %p3685_p13 }
0x11fa   :  { %3554 = vrsqrt.f32 %v2257_v58  ;;  %v3464_v58 = vld [vmem:[#allocation10 + $0x20] sm:$0xff]  }
0x11fb   :  { %p3688_p2 = pnand %p3687_p1, %p3681_p12 }
0x1200   :  { %v3553_v61 = vpop.eup %3552 }
0x1201   :  { %v2260_v47 = vmul.f32 %v3553_v61, %v2254_v59  ;;  %v3465_v59 = vld [vmem:[#allocation10 + $0x28] sm:$0xff]   ;;  %v3466_v61 = vld [vmem:[#allocation10 + $0x30] sm:$0xff]  }
0x1203   :  { %v2266_v25 = vmul.f32 %v2265_v46, %v2260_v47  ;;  %v3467_v47 = vld [vmem:[#allocation10 + $0x38] sm:$0xff]  }
0x1204   :  { %v3555_v21 = vpop.eup %3554 }
0x1205   :  { %v2261_v52 = vmul.f32 %v3555_v21, %v2255_v1  ;;  %v2272_v6 = vadd.f32 %v2271_v4, %v2266_v25 }
0x1207   :  { %v2267_v5 = vmul.f32 %v2265_v46, %v2261_v52 }
0x1209   :  { %v2273_v7 = vadd.f32 %v2271_v4, %v2267_v5 }
0x120b   :  { %v2274_v8 = vpack.c.bf16 %v2273_v7, %v2272_v6 }
0x120d   :  { %3247 = vmatmul.mubr.bf16.vlgmr.msra.gmra.mrb[52].mxu1 %v2274_v8  ;;  %v2888_v8 = vld [vmem:[#allocation8] ss:$0 sm:$0xff] }
0x120e   :  { %3293 = vmatprep.mubr.msk.bf16.mxu1 %vm3723_vm0, %v3721_v0  ;;  %3278 = vmatpush3.bf16.msra.mxu1 %v3460_v45 }
0x120f   :  { %3279 = vmatprep.subr.bf16.mxu1 %v3721_v0 }
0x12e0   :  { %v2378_v15 = vpop.f32.mrb[52].mxu1 }
0x12e1   :  { %v2379_v18 = vadd.f32 %v2378_v15, %v2295_v26  ;;  %v3248_v19 = vpop.f32.mrb[53].mxu1 }
0x12e2   :  { %v2381_v62 = vpop.f32.mrb[54].mxu1 }
0x12e3   :  { %v2877_v3 = vmul.f32 -1.702, %v2379_v18  ;;  %v2382_v2 = vadd.f32 %v2381_v62, %v2295_v26  ;;  %v3249_v16 = vpop.f32.mrb[55].mxu1 }
0x12e5   :  { %v2389_v22 = vmul.f32 1.442695, %v2877_v3  ;;  %v2878_v23 = vmul.f32 -1.702, %v2382_v2 }
0x12e7   :  { %3556 = vpow2.f32 %v2389_v22  ;;  %v2391_v27 = vmul.f32 1.442695, %v2878_v23 }
0x12e9   :  { %3558 = vpow2.f32 %v2391_v27 }
0x12f1   :  { %v3557_v28 = vpop.eup %3556 }
0x12f2   :  { %v2393_v30 = vadd.f32 1.0, %v3557_v28 }
0x12f3   :  { %v3559_v20 = vpop.eup %3558 }
0x12f4   :  { %3560 = vrcp.f32 %v2393_v30  ;;  %v2394_v56 = vadd.f32 1.0, %v3559_v20 }
0x12f6   :  { %3562 = vrcp.f32 %v2394_v56 }
0x12fe   :  { %v3561_v60 = vpop.eup %3560 }
0x12ff   :  { %v2399_v31 = vmul.f32 %v3561_v60, %v2379_v18 }
0x1300   :  { %v3563_v17 = vpop.eup %3562 }
0x1301   :  { %v2400_v32 = vmul.f32 %v3563_v17, %v2382_v2 }
0x1303   :  { %v2401_v34 = vpack.c.bf16 %v2400_v32, %v2399_v31 }
0x1305   :  { %3267 = vmatmul.mubr.bf16.vlgmr.msra.gmra.mrb[44].mxu0 %v2401_v34 }
0x1306   :  { %3274 = vmatprep.mubr.msk.f32.mxu0 %vm3723_vm0, %v3721_v0 }
0x13d8   :  { %v2505_v38 = vpop.f32.mrb[44].mxu0 }
0x13d9   :  { %v2506_v33 = vadd.f32 %v2505_v38, %v2422_v37  ;;  %v3268_v39 = vpop.f32.mrb[45].mxu0 }
0x13da   :  { %v2508_v40 = vpop.f32.mrb[46].mxu0 }
0x13db   :  { %v2509_v35 = vadd.f32 %v2508_v40, %v2422_v37  ;;  %v3269_v42 = vpop.f32.mrb[47].mxu0  ;;  %v2512_v43 = vadd.f32 %v2506_v33, %v4282_v24 }
0x13dd   :  { %v2513_v44 = vadd.f32 %v2509_v35, %v4285_v29  ;;  %v3461_v29 = vld [vmem:[#allocation10 + $0x8] sm:$0xff]  }
0x13de   :  { %3280 = vmatpush3.bf16.msra.mxu1 %v3461_v29 }
0x13df   :  { %v3298_v48 = vpack.c.bf16 %v2513_v44, %v2512_v43  ;;  %3281 = vmatprep.subr.bf16.mxu1 %v3721_v0 }
0x13e1   :  { %3299 = vmatpush3.bf16.msra.mxu0 %v3298_v48 }
0x13e2   :  { %3282 = vmatpush3.bf16.msra.mxu1 %v3462_v54 }
0x13e3   :  { %3283 = vmatprep.subr.bf16.mxu1 %v3721_v0 }
0x13e4   :  { %3275 = vmatmul.mubr.msk.f32.vlgmr.msra.gmra.mrb[48].mxu0 %vm456_vm2, %v2514_v50 }
0x13e6   :  { %3284 = vmatpush3.bf16.msra.mxu1 %v3463_v55 }
0x13e7   :  { %3285 = vmatprep.subr.bf16.mxu1 %v3721_v0 }
0x13ea   :  { %3286 = vmatpush3.bf16.msra.mxu1 %v3464_v58 }
0x13eb   :  { %3287 = vmatprep.subr.bf16.mxu1 %v3721_v0 }
0x13ee   :  { %3288 = vmatpush3.bf16.msra.mxu1 %v3465_v59 }
0x13ef   :  { %3289 = vmatprep.subr.bf16.mxu1 %v3721_v0 }
0x13f2   :  { %3290 = vmatpush3.bf16.msra.mxu1 %v3466_v61 }
0x13f3   :  { %3291 = vmatprep.subr.bf16.mxu1 %v3721_v0 }
0x13f6   :  { %3292 = vmatpush3.bf16.msra.mxu1 %v3467_v47 }
0x14b7   :  { %v2584_v49 = vpop.f32.mrb[48].mxu0 }
0x14b8   :  { %v2591_v41 = vsel %vm2590_vm5, %v2584_v49, 0.0  ;;  %v2595_v51 = vmul.f32 %v2584_v49, %v2584_v49  ;;  %v3276_v53 = vpop.f32.mrb[49].mxu0 }
0x14b9   :  { %2592 = vadd.xlane.f32.xlu0 %v2591_v41 }
0x14ba   :  { %v2596_v24 = vsel %vm2590_vm5, %v2595_v51, 0.0 }
0x14bb   :  { %2597 = vadd.xlane.f32.xlu1 %v2596_v24 }
0x1546   :  { %v2593_v46 = vpop.xlane.xlu0 %2592 }
0x1547   :  { %v2594_v1 = vmul.f32 0.03125, %v2593_v46 }
0x1548   :  { %v2598_v21 = vpop.xlane.xlu1 %2597 }
0x1549   :  { %v2600_v52 = vmul.f32 %v2594_v1, %v2594_v1  ;;  %v2599_v25 = vmul.f32 0.03125, %v2598_v21  ;;  %v2602_v6 = vsub.f32 %v2584_v49, %v2594_v1 }
0x154b   :  { %v2601_v4 = vsub.f32 %v2599_v25, %v2600_v52 }
0x154d   :  { %v2603_v5 = vadd.f32 1e-05, %v2601_v4 }
0x154f   :  { %3564 = vrsqrt.f32 %v2603_v5 }
0x1559   :  { %v3565_v7 = vpop.eup %3564 }
0x155a   :  { %v2605_v9 = vmul.f32 %v3565_v7, %v2602_v6 }
0x155c   :  { %v2610_v10 = vmul.f32 %v2888_v8, %v2605_v9 }
0x155e   :  { %v2615_v63 = vadd.f32 %v2889_v57, %v2610_v10 }
0x1560   :  { %v2616_v11 = vpack.c.bf16 %v2615_v63, %v2615_v63 }
0x1562   :  { %3294 = vmatmul.mubr.bf16.vlgmr.msra.gmra.mrb[56].mxu1 %v2616_v11 }
0x1635   :  { %v2715_v0 = vpop.f32.mrb[56].mxu1 }
0x1636   :  { %2721 = vst [vmem:[#allocation11] sm:$0x3] %v2715_v0  ;;  %v3295_v12 = vpop.f32.mrb[57].mxu1 }
0x1637   :  { %v2718_v13 = vpop.f32.mrb[58].mxu1 }
0x1638   :  { %3691 = shalt.err (!%p3688_p2)
}
0x1639   :  { %s3692_s27 = scalar_lea.hbm %s4385_s10, 32 }
0x163a   :  { %p3693_p3 = scmp.ne.s32.totalorder %s4385_s10, %s3692_s27  ;;  %p3696_p4 = scmp.lt.u32.totalorder %s3692_s27, %s4385_s10 }
0x163c   :  { %p3698_p5 = pnand %p3696_p4, %p3693_p3 }
0x163e   :  { %3701 = shalt.err (!%p3698_p5)
}
0x163f   :  { %2731 = dma.vmem_to_hbm [thread:$0]  %s2729_s30, 32, %s4385_s10, [#allocation4]   ;;  %v3296_v14 = vpop.f32.mrb[59].mxu1 }
0x1640   :  { %3708 = dma.done.wait [#allocation4], 32  }
0x1641   :  { %3709 = vsyncadd [#allocation4], 4294967264 }
0x1642   :  { %2735 = vsyncpa [#allocation3], 1 }
0x1643   :  { %2736 = vsyncpa [#allocation6], 1 }
0x1644   :  { %2737 = vsyncpa [#allocation9], 1 }
0x1645   :  { %2738 = vsyncpa [#allocation4], 1 }

</bundles_post_ra>
